<compile_context>
chip_gen: v6e
topology: v6e:2x2x1
jax: 0.10.0
libtpu: 0.0.40
codegen_flags: <defaults>
</compile_context>

<pallas_src>
import math

import jax
import jax.numpy as jnp
from jax import lax
from jax.experimental import pallas as pl
from jax.experimental.pallas import tpu as pltpu


def _sigmoid(x):
    # numerically stable sigmoid via the EUP tanh path
    return 0.5 * (jnp.tanh(0.5 * x) + 1.0)


# ----------------------------------------------------------------------------
# Kernel 1: fused conv stack  (3x [conv1d(k=5, pad=2, stride=1) + BN + ReLU])
# ----------------------------------------------------------------------------
def conv_stack_kernel(xp_ref, w1_ref, s1_ref, b1_ref, w2_ref, s2_ref, b2_ref,
                      w3_ref, s3_ref, b3_ref, out_ref, a1_scr, a2_scr):
    # xp_ref : [B, T+4, 1] f32   (input, zero padded by 2 on each time side)
    # w1     : [K, C1] f32       (Cin=1 -> VPU broadcast path)
    # w2     : [K, C1, C2] bf16  w3: [K, C2, C3] bf16
    # s*/b*  : [1, C] f32        (BatchNorm + conv bias folded into scale/bias)
    # out    : [B, T, C3] bf16
    # a1_scr : [T+4, C1] f32     a2_scr: [T+4, C2] f32  (zero-padded activations)
    B = xp_ref.shape[0]
    T = xp_ref.shape[1] - 4
    K = w1_ref.shape[0]
    C1 = w1_ref.shape[1]
    C2 = w2_ref.shape[2]
    C3 = w3_ref.shape[2]

    # zero the padding borders once; rows [2, 2+T) are overwritten per batch.
    a1_scr[...] = jnp.zeros_like(a1_scr)
    a2_scr[...] = jnp.zeros_like(a2_scr)

    for b in range(B):                       # B is small -> static unroll
        xb = xp_ref[b]                       # [T+4, 1]

        # ---- conv1 (Cin=1): broadcast-multiply accumulate on the VPU
        y1 = jnp.zeros((T, C1), jnp.float32)
        for k in range(K):
            y1 = y1 + xb[k:k + T, :] * w1_ref[k:k + 1, :]
        y1 = jnp.maximum(y1 * s1_ref[...] + b1_ref[...], 0.0)
        a1_scr[2:2 + T, :] = y1

        # ---- conv2: K time-shifted matmuls, bf16 MXU operands, f32 accumulate
        y2 = jnp.zeros((T, C2), jnp.float32)
        for k in range(K):
            y2 = y2 + jnp.dot(a1_scr[k:k + T, :].astype(jnp.bfloat16),
                              w2_ref[k], preferred_element_type=jnp.float32)
        y2 = jnp.maximum(y2 * s2_ref[...] + b2_ref[...], 0.0)
        a2_scr[2:2 + T, :] = y2

        # ---- conv3
        y3 = jnp.zeros((T, C3), jnp.float32)
        for k in range(K):
            y3 = y3 + jnp.dot(a2_scr[k:k + T, :].astype(jnp.bfloat16),
                              w3_ref[k], preferred_element_type=jnp.float32)
        y3 = jnp.maximum(y3 * s3_ref[...] + b3_ref[...], 0.0)
        out_ref[b] = y3.astype(out_ref.dtype)


def conv_stack(xp, w1, s1, b1, w2, s2, b2, w3, s3, b3):
    B, Tp4, _ = xp.shape
    T = Tp4 - 4
    C1 = w2.shape[1]
    C2 = w3.shape[1]
    C3 = w3.shape[2]
    # TODO(synk): for very long sequences, tile over T (with a 2-sample halo per
    #             conv layer) instead of whole-sequence VMEM residency.
    return pl.pallas_call(
        conv_stack_kernel,
        out_shape=jax.ShapeDtypeStruct((B, T, C3), jnp.bfloat16),
        in_specs=[pl.BlockSpec(memory_space=pltpu.MemorySpace.VMEM)] * 10,
        out_specs=pl.BlockSpec(memory_space=pltpu.MemorySpace.VMEM),
        scratch_shapes=[pltpu.VMEM((Tp4, C1), jnp.float32),
                        pltpu.VMEM((Tp4, C2), jnp.float32)],
    )(xp, w1, s1, b1, w2, s2, b2, w3, s3, b3)


# ----------------------------------------------------------------------------
# Kernel 2: one BiLSTM layer (grid of 2 over direction, input projection hoisted)
# ----------------------------------------------------------------------------
def lstm_bidir_kernel(x_ref, wih_ref, whh_ref, b_ref, out_ref,
                      gx_scr, h_scr, c_scr):
    # grid: (2,) over direction; d == 0 forward, d == 1 backward (in-kernel reversal)
    # x_ref  : [T*B, In]  time-major rows (row = t*B + b), bf16 or f32
    # wih_ref: [1, In, 4H] bf16   whh_ref: [1, H, 4H] bf16   b_ref: [1, 1, 4H] f32
    # out_ref: [1, T, B, H] f32
    # gx_scr : [T*B, 4H] f32      h_scr/c_scr: [B, H] f32
    d = pl.program_id(0)
    B, H = h_scr.shape
    T = out_ref.shape[1]

    # Hoisted input projection: ONE big MXU matmul for the whole sequence.
    gx_scr[...] = (jnp.dot(x_ref[...].astype(jnp.bfloat16), wih_ref[0],
                           preferred_element_type=jnp.float32) + b_ref[0])

    h_scr[...] = jnp.zeros_like(h_scr)
    c_scr[...] = jnp.zeros_like(c_scr)
    whh = whh_ref[0]                       # [H, 4H] bf16, loop invariant
    is_bwd = d == 1

    def body(t, carry):
        tt = jnp.where(is_bwd, T - 1 - t, t)
        h = h_scr[...]
        c = c_scr[...]
        g = gx_scr[pl.ds(tt * B, B), :] + jnp.dot(
            h.astype(jnp.bfloat16), whh, preferred_element_type=jnp.float32)
        i_g = _sigmoid(g[:, 0 * H:1 * H])      # PyTorch gate order: i, f, g, o
        f_g = _sigmoid(g[:, 1 * H:2 * H])
        g_g = jnp.tanh(g[:, 2 * H:3 * H])
        o_g = _sigmoid(g[:, 3 * H:4 * H])
        c_new = f_g * c + i_g * g_g
        h_new = o_g * jnp.tanh(c_new)
        h_scr[...] = h_new
        c_scr[...] = c_new
        out_ref[0, tt] = h_new
        return carry

    lax.fori_loop(0, T, body, 0)


def lstm_bidir_layer(x_flat, wih2, whh2, bias2, T, B, H):
    TB, In = x_flat.shape
    return pl.pallas_call(
        lstm_bidir_kernel,
        out_shape=jax.ShapeDtypeStruct((2, T, B, H), jnp.float32),
        grid=(2,),
        in_specs=[
            pl.BlockSpec((TB, In), lambda d: (0, 0)),
            pl.BlockSpec((1, In, 4 * H), lambda d: (d, 0, 0)),
            pl.BlockSpec((1, H, 4 * H), lambda d: (d, 0, 0)),
            pl.BlockSpec((1, 1, 4 * H), lambda d: (d, 0, 0)),
        ],
        out_specs=pl.BlockSpec((1, T, B, H), lambda d: (d, 0, 0, 0)),
        scratch_shapes=[
            pltpu.VMEM((TB, 4 * H), jnp.float32),
            pltpu.VMEM((B, H), jnp.float32),
            pltpu.VMEM((B, H), jnp.float32),
        ],
        compiler_params=pltpu.CompilerParams(
            dimension_semantics=("parallel",)),
    )(x_flat, wih2, whh2, bias2)


# ----------------------------------------------------------------------------
# Kernel 3: attention (sigmoid + normalize over T) + fc1(ReLU) + fc2(sigmoid)
# ----------------------------------------------------------------------------
def head_kernel(x_ref, watt_ref, batt_ref, w1_ref, b1_ref, w2_ref, b2_ref,
                o_ref):
    # x_ref: [B, T, 2H] f32; watt/w2: [1, 2H]/[1, H] f32 rows; batt/b2: [1, 1];
    # w1: [2H, H] bf16; b1: [1, H]; o_ref: [B*T, 1] f32 (row = b*T + t)
    B, T, D2 = x_ref.shape
    x = x_ref[...]
    # attention logits: VPU broadcast-multiply + lane reduction (no N=1 matmul)
    att = _sigmoid(jnp.sum(x * watt_ref[...], axis=-1, keepdims=True)
                   + batt_ref[...])                              # [B, T, 1]
    att = att / (jnp.sum(att, axis=1, keepdims=True) + 1e-8)
    ctx = (att * x).reshape(B * T, D2)
    h1 = jnp.maximum(
        jnp.dot(ctx.astype(jnp.bfloat16), w1_ref[...],
                preferred_element_type=jnp.float32) + b1_ref[...], 0.0)
    # TODO(synk): dropout after fc1 is identity (eval mode).
    o_ref[...] = _sigmoid(jnp.sum(h1 * w2_ref[...], axis=-1, keepdims=True)
                          + b2_ref[...])


def head(lstm_bt, watt, batt, w1, b1, w2, b2):
    B, T, _ = lstm_bt.shape
    return pl.pallas_call(
        head_kernel,
        out_shape=jax.ShapeDtypeStruct((B * T, 1), jnp.float32),
        in_specs=[pl.BlockSpec(memory_space=pltpu.MemorySpace.VMEM)] * 7,
        out_specs=pl.BlockSpec(memory_space=pltpu.MemorySpace.VMEM),
    )(lstm_bt, watt, batt, w1, b1, w2, b2)


# ----------------------------------------------------------------------------
# Parameter init (deterministic, shapes follow the PyTorch module __init__)
# ----------------------------------------------------------------------------
def init_params(key, hidden=32):
    keys = iter(jax.random.split(key, 32))
    eps = 1e-5

    def conv_block(kw, kb, cin, cout, K=5):
        std = math.sqrt(2.0 / (cout * K))                     # kaiming, fan_out
        w = jax.random.normal(kw, (K, cin, cout), jnp.float32) * std
        bnd = 1.0 / math.sqrt(cin * K)
        b_conv = jax.random.uniform(kb, (cout,), jnp.float32, -bnd, bnd)
        gamma = jnp.ones((cout,), jnp.float32)
        beta = jnp.zeros((cout,), jnp.float32)
        mean = jnp.zeros((cout,), jnp.float32)
        var = jnp.ones((cout,), jnp.float32)
        scale = gamma / jnp.sqrt(var + eps)                   # fold BN
        bias = beta + scale * (b_conv - mean)
        return w, scale[None, :], bias[None, :]

    w1c, s1, b1 = conv_block(next(keys), next(keys), 1, 32)
    w2c, s2, b2 = conv_block(next(keys), next(keys), 32, 64)
    w3c, s3, b3 = conv_block(next(keys), next(keys), 64, 128)
    conv = dict(w1=w1c[:, 0, :],                              # [5, 32] f32 (VPU)
                s1=s1, b1=b1,
                w2=w2c.astype(jnp.bfloat16),                  # [5, 32, 64]
                s2=s2, b2=b2,
                w3=w3c.astype(jnp.bfloat16),                  # [5, 64, 128]
                s3=s3, b3=b3)

    H = hidden
    bound = 1.0 / math.sqrt(H)
    lstm_layers = []
    in_size = 128
    for _layer in range(2):
        wih_d, whh_d, b_d = [], [], []
        for _d in range(2):
            wih = jax.random.uniform(next(keys), (in_size, 4 * H), jnp.float32,
                                     -bound, bound)
            whh = jax.random.uniform(next(keys), (H, 4 * H), jnp.float32,
                                     -bound, bound)
            bih = jax.random.uniform(next(keys), (4 * H,), jnp.float32,
                                     -bound, bound)
            bhh = jax.random.uniform(next(keys), (4 * H,), jnp.float32,
                                     -bound, bound)
            wih_d.append(wih)
            whh_d.append(whh)
            b_d.append((bih + bhh)[None, :])
        lstm_layers.append(dict(
            wih=jnp.stack(wih_d).astype(jnp.bfloat16),        # [2, In, 4H]
            whh=jnp.stack(whh_d).astype(jnp.bfloat16),        # [2, H, 4H]
            b=jnp.stack(b_d)))                                # [2, 1, 4H] f32
        in_size = 2 * H

    D2 = 2 * H

    def xavier(k, shape):
        std = math.sqrt(2.0 / (shape[0] + shape[1]))
        return jax.random.normal(k, shape, jnp.float32) * std

    head_p = dict(
        watt=xavier(next(keys), (D2, 1)).reshape(1, D2),      # row form (VPU)
        batt=jnp.full((1, 1), 0.01, jnp.float32),
        w1=xavier(next(keys), (D2, H)).astype(jnp.bfloat16),  # [2H, H]
        b1=jnp.full((1, H), 0.01, jnp.float32),
        w2=xavier(next(keys), (H, 1)).reshape(1, H),          # row form (VPU)
        b2=jnp.full((1, 1), 0.01, jnp.float32))

    return dict(conv=conv, lstm=lstm_layers, head=head_p)


# ----------------------------------------------------------------------------
# Forward pass
# ----------------------------------------------------------------------------
def forward(x, params):
    """x: [B, T] -> [B, T, 1]   (eval-mode forward of VFSegmentationModel)."""
    B, T = x.shape
    cv = params["conv"]
    H = params["lstm"][0]["whh"].shape[1]

    # fused CNN stack (pad time once in XLA; channels-last inside the kernel)
    xp = jnp.pad(x.astype(jnp.float32), ((0, 0), (2, 2)))[:, :, None]
    conv_out = conv_stack(xp, cv["w1"], cv["s1"], cv["b1"],
                          cv["w2"], cv["s2"], cv["b2"],
                          cv["w3"], cv["s3"], cv["b3"])          # [B, T, 128] bf16

    # BiLSTM: time-major flattened rows (row index = t*B + b)
    layer_in = jnp.transpose(conv_out, (1, 0, 2)).reshape(T * B, conv_out.shape[2])
    layer_cat = None
    for lp in params["lstm"]:
        out2 = lstm_bidir_layer(layer_in, lp["wih"], lp["whh"], lp["b"], T, B, H)
        layer_cat = jnp.concatenate([out2[0], out2[1]], axis=-1)  # [T, B, 2H]
        layer_in = layer_cat.reshape(T * B, 2 * H)
        # TODO(synk): inter-layer dropout of nn.LSTM is identity (eval mode).

    # attention + MLP head
    lstm_bt = jnp.transpose(layer_cat, (1, 0, 2))                 # [B, T, 2H]
    hd = params["head"]
    out = head(lstm_bt, hd["watt"], hd["batt"], hd["w1"], hd["b1"],
               hd["w2"], hd["b2"])                                # [B*T, 1]
    return out.reshape(B, T, 1)


if __name__ == "__main__":
    key = jax.random.PRNGKey(0)
    kx, kp = jax.random.split(key)
    B, T = 2, 16
    x = jax.random.normal(kx, (B, T), dtype=jnp.float32)
    params = init_params(kp, hidden=32)

    fwd = jax.jit(forward)
    out = jax.block_until_ready(fwd(x, params))

    assert out.shape == (B, T, 1), out.shape
    assert bool(jnp.all(jnp.isfinite(out)))
    assert bool(jnp.all((out >= 0.0) & (out <= 1.0)))    # final sigmoid range
    print("KERNEL_OK")
</pallas_src>

<mosaic_0001>
module attributes {stable_mosaic.version = 11 : i64} {
  func.func @conv_stack_kernel(%arg0: memref<2x20x1xf32, #tpu.memory_space<vmem>>, %arg1: memref<5x32xf32, #tpu.memory_space<vmem>>, %arg2: memref<1x32xf32, #tpu.memory_space<vmem>>, %arg3: memref<1x32xf32, #tpu.memory_space<vmem>>, %arg4: memref<5x32x64xbf16, #tpu.memory_space<vmem>>, %arg5: memref<1x64xf32, #tpu.memory_space<vmem>>, %arg6: memref<1x64xf32, #tpu.memory_space<vmem>>, %arg7: memref<5x64x128xbf16, #tpu.memory_space<vmem>>, %arg8: memref<1x128xf32, #tpu.memory_space<vmem>>, %arg9: memref<1x128xf32, #tpu.memory_space<vmem>>, %arg10: memref<2x16x128xbf16, #tpu.memory_space<vmem>>, %arg11: memref<20x32xf32, #tpu.memory_space<vmem>>, %arg12: memref<20x64xf32, #tpu.memory_space<vmem>>) attributes {dimension_semantics = [], scalar_prefetch = 0 : i64, scratch_operands = 2 : i64, tpu.core_type = #tpu.core_type<tc>} {
    %cst = arith.constant 0.000000e+00 : f32
    %0 = vector.broadcast %cst : f32 to vector<20x32xf32>
    %c0 = arith.constant 0 : index
    %c0_0 = arith.constant 0 : index
    %1 = vector.load %arg11[%c0, %c0_0] : memref<20x32xf32, #tpu.memory_space<vmem>>, vector<20x32xf32>
    tpu.vector_store %arg11[%c0, %c0_0], %0 {strides = array<i32>} : memref<20x32xf32, #tpu.memory_space<vmem>>, vector<20x32xf32>,
    %cst_1 = arith.constant 0.000000e+00 : f32
    %2 = vector.broadcast %cst_1 : f32 to vector<20x64xf32>
    %c0_2 = arith.constant 0 : index
    %c0_3 = arith.constant 0 : index
    %3 = vector.load %arg12[%c0_2, %c0_3] : memref<20x64xf32, #tpu.memory_space<vmem>>, vector<20x64xf32>
    tpu.vector_store %arg12[%c0_2, %c0_3], %2 {strides = array<i32>} : memref<20x64xf32, #tpu.memory_space<vmem>>, vector<20x64xf32>,
    %c0_4 = arith.constant 0 : index
    %c0_5 = arith.constant 0 : index
    %c0_6 = arith.constant 0 : index
    %4 = vector.load %arg0[%c0_4, %c0_5, %c0_6] : memref<2x20x1xf32, #tpu.memory_space<vmem>>, vector<1x20x1xf32>
    %5 = vector.shape_cast %4 : vector<1x20x1xf32> to vector<20x1xf32>
    %cst_7 = arith.constant 0.000000e+00 : f32
    %6 = vector.broadcast %cst_7 : f32 to vector<16x32xf32>
    %7 = vector.extract_strided_slice %5 {offsets = [0, 0], sizes = [16, 1], strides = [1, 1]} : vector<20x1xf32> to vector<16x1xf32>
    %c0_8 = arith.constant 0 : index
    %c0_9 = arith.constant 0 : index
    %8 = vector.load %arg1[%c0_8, %c0_9] : memref<5x32xf32, #tpu.memory_space<vmem>>, vector<1x32xf32>
    %9 = vector.broadcast %7 : vector<16x1xf32> to vector<16x32xf32>
    %10 = vector.broadcast %8 : vector<1x32xf32> to vector<16x32xf32>
    %11 = arith.mulf %9, %10 : vector<16x32xf32>
    %12 = arith.addf %6, %11 : vector<16x32xf32>
    %13 = vector.extract_strided_slice %5 {offsets = [1, 0], sizes = [16, 1], strides = [1, 1]} : vector<20x1xf32> to vector<16x1xf32>
    %c1 = arith.constant 1 : index
    %c0_10 = arith.constant 0 : index
    %14 = vector.load %arg1[%c1, %c0_10] : memref<5x32xf32, #tpu.memory_space<vmem>>, vector<1x32xf32>
    %15 = vector.broadcast %13 : vector<16x1xf32> to vector<16x32xf32>
    %16 = vector.broadcast %14 : vector<1x32xf32> to vector<16x32xf32>
    %17 = arith.mulf %15, %16 : vector<16x32xf32>
    %18 = arith.addf %12, %17 : vector<16x32xf32>
    %19 = vector.extract_strided_slice %5 {offsets = [2, 0], sizes = [16, 1], strides = [1, 1]} : vector<20x1xf32> to vector<16x1xf32>
    %c2 = arith.constant 2 : index
    %c0_11 = arith.constant 0 : index
    %20 = vector.load %arg1[%c2, %c0_11] : memref<5x32xf32, #tpu.memory_space<vmem>>, vector<1x32xf32>
    %21 = vector.broadcast %19 : vector<16x1xf32> to vector<16x32xf32>
    %22 = vector.broadcast %20 : vector<1x32xf32> to vector<16x32xf32>
    %23 = arith.mulf %21, %22 : vector<16x32xf32>
    %24 = arith.addf %18, %23 : vector<16x32xf32>
    %25 = vector.extract_strided_slice %5 {offsets = [3, 0], sizes = [16, 1], strides = [1, 1]} : vector<20x1xf32> to vector<16x1xf32>
    %c3 = arith.constant 3 : index
    %c0_12 = arith.constant 0 : index
    %26 = vector.load %arg1[%c3, %c0_12] : memref<5x32xf32, #tpu.memory_space<vmem>>, vector<1x32xf32>
    %27 = vector.broadcast %25 : vector<16x1xf32> to vector<16x32xf32>
    %28 = vector.broadcast %26 : vector<1x32xf32> to vector<16x32xf32>
    %29 = arith.mulf %27, %28 : vector<16x32xf32>
    %30 = arith.addf %24, %29 : vector<16x32xf32>
    %31 = vector.extract_strided_slice %5 {offsets = [4, 0], sizes = [16, 1], strides = [1, 1]} : vector<20x1xf32> to vector<16x1xf32>
    %c4 = arith.constant 4 : index
    %c0_13 = arith.constant 0 : index
    %32 = vector.load %arg1[%c4, %c0_13] : memref<5x32xf32, #tpu.memory_space<vmem>>, vector<1x32xf32>
    %33 = vector.broadcast %31 : vector<16x1xf32> to vector<16x32xf32>
    %34 = vector.broadcast %32 : vector<1x32xf32> to vector<16x32xf32>
    %35 = arith.mulf %33, %34 : vector<16x32xf32>
    %36 = arith.addf %30, %35 : vector<16x32xf32>
    %c0_14 = arith.constant 0 : index
    %c0_15 = arith.constant 0 : index
    %37 = vector.load %arg2[%c0_14, %c0_15] : memref<1x32xf32, #tpu.memory_space<vmem>>, vector<1x32xf32>
    %38 = vector.broadcast %37 : vector<1x32xf32> to vector<16x32xf32>
    %39 = arith.mulf %36, %38 : vector<16x32xf32>
    %c0_16 = arith.constant 0 : index
    %c0_17 = arith.constant 0 : index
    %40 = vector.load %arg3[%c0_16, %c0_17] : memref<1x32xf32, #tpu.memory_space<vmem>>, vector<1x32xf32>
    %41 = vector.broadcast %40 : vector<1x32xf32> to vector<16x32xf32>
    %42 = arith.addf %39, %41 : vector<16x32xf32>
    %cst_18 = arith.constant 0.000000e+00 : f32
    %43 = vector.broadcast %cst_18 : f32 to vector<16x32xf32>
    %44 = arith.maximumf %42, %43 : vector<16x32xf32>
    %c2_19 = arith.constant 2 : index
    %c0_20 = arith.constant 0 : index
    %45 = vector.load %arg11[%c2_19, %c0_20] : memref<20x32xf32, #tpu.memory_space<vmem>>, vector<16x32xf32>
    tpu.vector_store %arg11[%c2_19, %c0_20], %44 {strides = array<i32>} : memref<20x32xf32, #tpu.memory_space<vmem>>, vector<16x32xf32>,
    %cst_21 = arith.constant 0.000000e+00 : f32
    %46 = vector.broadcast %cst_21 : f32 to vector<16x64xf32>
    %c0_22 = arith.constant 0 : index
    %c0_23 = arith.constant 0 : index
    %47 = vector.load %arg11[%c0_22, %c0_23] : memref<20x32xf32, #tpu.memory_space<vmem>>, vector<16x32xf32>
    %48 = arith.truncf %47 : vector<16x32xf32> to vector<16x32xbf16>
    %c0_24 = arith.constant 0 : index
    %c0_25 = arith.constant 0 : index
    %c0_26 = arith.constant 0 : index
    %49 = vector.load %arg4[%c0_24, %c0_25, %c0_26] : memref<5x32x64xbf16, #tpu.memory_space<vmem>>, vector<1x32x64xbf16>
    %50 = vector.shape_cast %49 : vector<1x32x64xbf16> to vector<32x64xbf16>
    %cst_27 = arith.constant dense<0.000000e+00> : vector<16x64xf32>
    %51 = tpu.matmul %48, %50, %cst_27 {dimension_numbers = #tpu.dot_dimension_numbers<[1], [0], [0], [1], [0, 0, 1, 1], [], []>} : vector<16x32xbf16>, vector<32x64xbf16>, vector<16x64xf32> -> vector<16x64xf32>
    %52 = arith.addf %46, %51 : vector<16x64xf32>
    %c1_28 = arith.constant 1 : index
    %c0_29 = arith.constant 0 : index
    %53 = vector.load %arg11[%c1_28, %c0_29] : memref<20x32xf32, #tpu.memory_space<vmem>>, vector<16x32xf32>
    %54 = arith.truncf %53 : vector<16x32xf32> to vector<16x32xbf16>
    %c1_30 = arith.constant 1 : index
    %c0_31 = arith.constant 0 : index
    %c0_32 = arith.constant 0 : index
    %55 = vector.load %arg4[%c1_30, %c0_31, %c0_32] : memref<5x32x64xbf16, #tpu.memory_space<vmem>>, vector<1x32x64xbf16>
    %56 = vector.shape_cast %55 : vector<1x32x64xbf16> to vector<32x64xbf16>
    %cst_33 = arith.constant dense<0.000000e+00> : vector<16x64xf32>
    %57 = tpu.matmul %54, %56, %cst_33 {dimension_numbers = #tpu.dot_dimension_numbers<[1], [0], [0], [1], [0, 0, 1, 1], [], []>} : vector<16x32xbf16>, vector<32x64xbf16>, vector<16x64xf32> -> vector<16x64xf32>
    %58 = arith.addf %52, %57 : vector<16x64xf32>
    %c2_34 = arith.constant 2 : index
    %c0_35 = arith.constant 0 : index
    %59 = vector.load %arg11[%c2_34, %c0_35] : memref<20x32xf32, #tpu.memory_space<vmem>>, vector<16x32xf32>
    %60 = arith.truncf %59 : vector<16x32xf32> to vector<16x32xbf16>
    %c2_36 = arith.constant 2 : index
    %c0_37 = arith.constant 0 : index
    %c0_38 = arith.constant 0 : index
    %61 = vector.load %arg4[%c2_36, %c0_37, %c0_38] : memref<5x32x64xbf16, #tpu.memory_space<vmem>>, vector<1x32x64xbf16>
    %62 = vector.shape_cast %61 : vector<1x32x64xbf16> to vector<32x64xbf16>
    %cst_39 = arith.constant dense<0.000000e+00> : vector<16x64xf32>
    %63 = tpu.matmul %60, %62, %cst_39 {dimension_numbers = #tpu.dot_dimension_numbers<[1], [0], [0], [1], [0, 0, 1, 1], [], []>} : vector<16x32xbf16>, vector<32x64xbf16>, vector<16x64xf32> -> vector<16x64xf32>
    %64 = arith.addf %58, %63 : vector<16x64xf32>
    %c3_40 = arith.constant 3 : index
    %c0_41 = arith.constant 0 : index
    %65 = vector.load %arg11[%c3_40, %c0_41] : memref<20x32xf32, #tpu.memory_space<vmem>>, vector<16x32xf32>
    %66 = arith.truncf %65 : vector<16x32xf32> to vector<16x32xbf16>
    %c3_42 = arith.constant 3 : index
    %c0_43 = arith.constant 0 : index
    %c0_44 = arith.constant 0 : index
    %67 = vector.load %arg4[%c3_42, %c0_43, %c0_44] : memref<5x32x64xbf16, #tpu.memory_space<vmem>>, vector<1x32x64xbf16>
    %68 = vector.shape_cast %67 : vector<1x32x64xbf16> to vector<32x64xbf16>
    %cst_45 = arith.constant dense<0.000000e+00> : vector<16x64xf32>
    %69 = tpu.matmul %66, %68, %cst_45 {dimension_numbers = #tpu.dot_dimension_numbers<[1], [0], [0], [1], [0, 0, 1, 1], [], []>} : vector<16x32xbf16>, vector<32x64xbf16>, vector<16x64xf32> -> vector<16x64xf32>
    %70 = arith.addf %64, %69 : vector<16x64xf32>
    %c4_46 = arith.constant 4 : index
    %c0_47 = arith.constant 0 : index
    %71 = vector.load %arg11[%c4_46, %c0_47] : memref<20x32xf32, #tpu.memory_space<vmem>>, vector<16x32xf32>
    %72 = arith.truncf %71 : vector<16x32xf32> to vector<16x32xbf16>
    %c4_48 = arith.constant 4 : index
    %c0_49 = arith.constant 0 : index
    %c0_50 = arith.constant 0 : index
    %73 = vector.load %arg4[%c4_48, %c0_49, %c0_50] : memref<5x32x64xbf16, #tpu.memory_space<vmem>>, vector<1x32x64xbf16>
    %74 = vector.shape_cast %73 : vector<1x32x64xbf16> to vector<32x64xbf16>
    %cst_51 = arith.constant dense<0.000000e+00> : vector<16x64xf32>
    %75 = tpu.matmul %72, %74, %cst_51 {dimension_numbers = #tpu.dot_dimension_numbers<[1], [0], [0], [1], [0, 0, 1, 1], [], []>} : vector<16x32xbf16>, vector<32x64xbf16>, vector<16x64xf32> -> vector<16x64xf32>
    %76 = arith.addf %70, %75 : vector<16x64xf32>
    %c0_52 = arith.constant 0 : index
    %c0_53 = arith.constant 0 : index
    %77 = vector.load %arg5[%c0_52, %c0_53] : memref<1x64xf32, #tpu.memory_space<vmem>>, vector<1x64xf32>
    %78 = vector.broadcast %77 : vector<1x64xf32> to vector<16x64xf32>
    %79 = arith.mulf %76, %78 : vector<16x64xf32>
    %c0_54 = arith.constant 0 : index
    %c0_55 = arith.constant 0 : index
    %80 = vector.load %arg6[%c0_54, %c0_55] : memref<1x64xf32, #tpu.memory_space<vmem>>, vector<1x64xf32>
    %81 = vector.broadcast %80 : vector<1x64xf32> to vector<16x64xf32>
    %82 = arith.addf %79, %81 : vector<16x64xf32>
    %cst_56 = arith.constant 0.000000e+00 : f32
    %83 = vector.broadcast %cst_56 : f32 to vector<16x64xf32>
    %84 = arith.maximumf %82, %83 : vector<16x64xf32>
    %c2_57 = arith.constant 2 : index
    %c0_58 = arith.constant 0 : index
    %85 = vector.load %arg12[%c2_57, %c0_58] : memref<20x64xf32, #tpu.memory_space<vmem>>, vector<16x64xf32>
    tpu.vector_store %arg12[%c2_57, %c0_58], %84 {strides = array<i32>} : memref<20x64xf32, #tpu.memory_space<vmem>>, vector<16x64xf32>,
    %cst_59 = arith.constant 0.000000e+00 : f32
    %86 = vector.broadcast %cst_59 : f32 to vector<16x128xf32>
    %c0_60 = arith.constant 0 : index
    %c0_61 = arith.constant 0 : index
    %87 = vector.load %arg12[%c0_60, %c0_61] : memref<20x64xf32, #tpu.memory_space<vmem>>, vector<16x64xf32>
    %88 = arith.truncf %87 : vector<16x64xf32> to vector<16x64xbf16>
    %c0_62 = arith.constant 0 : index
    %c0_63 = arith.constant 0 : index
    %c0_64 = arith.constant 0 : index
    %89 = vector.load %arg7[%c0_62, %c0_63, %c0_64] : memref<5x64x128xbf16, #tpu.memory_space<vmem>>, vector<1x64x128xbf16>
    %90 = vector.shape_cast %89 : vector<1x64x128xbf16> to vector<64x128xbf16>
    %cst_65 = arith.constant dense<0.000000e+00> : vector<16x128xf32>
    %91 = tpu.matmul %88, %90, %cst_65 {dimension_numbers = #tpu.dot_dimension_numbers<[1], [0], [0], [1], [0, 0, 1, 1], [], []>} : vector<16x64xbf16>, vector<64x128xbf16>, vector<16x128xf32> -> vector<16x128xf32>
    %92 = arith.addf %86, %91 : vector<16x128xf32>
    %c1_66 = arith.constant 1 : index
    %c0_67 = arith.constant 0 : index
    %93 = vector.load %arg12[%c1_66, %c0_67] : memref<20x64xf32, #tpu.memory_space<vmem>>, vector<16x64xf32>
    %94 = arith.truncf %93 : vector<16x64xf32> to vector<16x64xbf16>
    %c1_68 = arith.constant 1 : index
    %c0_69 = arith.constant 0 : index
    %c0_70 = arith.constant 0 : index
    %95 = vector.load %arg7[%c1_68, %c0_69, %c0_70] : memref<5x64x128xbf16, #tpu.memory_space<vmem>>, vector<1x64x128xbf16>
    %96 = vector.shape_cast %95 : vector<1x64x128xbf16> to vector<64x128xbf16>
    %cst_71 = arith.constant dense<0.000000e+00> : vector<16x128xf32>
    %97 = tpu.matmul %94, %96, %cst_71 {dimension_numbers = #tpu.dot_dimension_numbers<[1], [0], [0], [1], [0, 0, 1, 1], [], []>} : vector<16x64xbf16>, vector<64x128xbf16>, vector<16x128xf32> -> vector<16x128xf32>
    %98 = arith.addf %92, %97 : vector<16x128xf32>
    %c2_72 = arith.constant 2 : index
    %c0_73 = arith.constant 0 : index
    %99 = vector.load %arg12[%c2_72, %c0_73] : memref<20x64xf32, #tpu.memory_space<vmem>>, vector<16x64xf32>
    %100 = arith.truncf %99 : vector<16x64xf32> to vector<16x64xbf16>
    %c2_74 = arith.constant 2 : index
    %c0_75 = arith.constant 0 : index
    %c0_76 = arith.constant 0 : index
    %101 = vector.load %arg7[%c2_74, %c0_75, %c0_76] : memref<5x64x128xbf16, #tpu.memory_space<vmem>>, vector<1x64x128xbf16>
    %102 = vector.shape_cast %101 : vector<1x64x128xbf16> to vector<64x128xbf16>
    %cst_77 = arith.constant dense<0.000000e+00> : vector<16x128xf32>
    %103 = tpu.matmul %100, %102, %cst_77 {dimension_numbers = #tpu.dot_dimension_numbers<[1], [0], [0], [1], [0, 0, 1, 1], [], []>} : vector<16x64xbf16>, vector<64x128xbf16>, vector<16x128xf32> -> vector<16x128xf32>
    %104 = arith.addf %98, %103 : vector<16x128xf32>
    %c3_78 = arith.constant 3 : index
    %c0_79 = arith.constant 0 : index
    %105 = vector.load %arg12[%c3_78, %c0_79] : memref<20x64xf32, #tpu.memory_space<vmem>>, vector<16x64xf32>
    %106 = arith.truncf %105 : vector<16x64xf32> to vector<16x64xbf16>
    %c3_80 = arith.constant 3 : index
    %c0_81 = arith.constant 0 : index
    %c0_82 = arith.constant 0 : index
    %107 = vector.load %arg7[%c3_80, %c0_81, %c0_82] : memref<5x64x128xbf16, #tpu.memory_space<vmem>>, vector<1x64x128xbf16>
    %108 = vector.shape_cast %107 : vector<1x64x128xbf16> to vector<64x128xbf16>
    %cst_83 = arith.constant dense<0.000000e+00> : vector<16x128xf32>
    %109 = tpu.matmul %106, %108, %cst_83 {dimension_numbers = #tpu.dot_dimension_numbers<[1], [0], [0], [1], [0, 0, 1, 1], [], []>} : vector<16x64xbf16>, vector<64x128xbf16>, vector<16x128xf32> -> vector<16x128xf32>
    %110 = arith.addf %104, %109 : vector<16x128xf32>
    %c4_84 = arith.constant 4 : index
    %c0_85 = arith.constant 0 : index
    %111 = vector.load %arg12[%c4_84, %c0_85] : memref<20x64xf32, #tpu.memory_space<vmem>>, vector<16x64xf32>
    %112 = arith.truncf %111 : vector<16x64xf32> to vector<16x64xbf16>
    %c4_86 = arith.constant 4 : index
    %c0_87 = arith.constant 0 : index
    %c0_88 = arith.constant 0 : index
    %113 = vector.load %arg7[%c4_86, %c0_87, %c0_88] : memref<5x64x128xbf16, #tpu.memory_space<vmem>>, vector<1x64x128xbf16>
    %114 = vector.shape_cast %113 : vector<1x64x128xbf16> to vector<64x128xbf16>
    %cst_89 = arith.constant dense<0.000000e+00> : vector<16x128xf32>
    %115 = tpu.matmul %112, %114, %cst_89 {dimension_numbers = #tpu.dot_dimension_numbers<[1], [0], [0], [1], [0, 0, 1, 1], [], []>} : vector<16x64xbf16>, vector<64x128xbf16>, vector<16x128xf32> -> vector<16x128xf32>
    %116 = arith.addf %110, %115 : vector<16x128xf32>
    %c0_90 = arith.constant 0 : index
    %c0_91 = arith.constant 0 : index
    %117 = vector.load %arg8[%c0_90, %c0_91] : memref<1x128xf32, #tpu.memory_space<vmem>>, vector<1x128xf32>
    %118 = vector.broadcast %117 : vector<1x128xf32> to vector<16x128xf32>
    %119 = arith.mulf %116, %118 : vector<16x128xf32>
    %c0_92 = arith.constant 0 : index
    %c0_93 = arith.constant 0 : index
    %120 = vector.load %arg9[%c0_92, %c0_93] : memref<1x128xf32, #tpu.memory_space<vmem>>, vector<1x128xf32>
    %121 = vector.broadcast %120 : vector<1x128xf32> to vector<16x128xf32>
    %122 = arith.addf %119, %121 : vector<16x128xf32>
    %cst_94 = arith.constant 0.000000e+00 : f32
    %123 = vector.broadcast %cst_94 : f32 to vector<16x128xf32>
    %124 = arith.maximumf %122, %123 : vector<16x128xf32>
    %125 = arith.truncf %124 : vector<16x128xf32> to vector<16x128xbf16>
    %c0_95 = arith.constant 0 : index
    %c0_96 = arith.constant 0 : index
    %c0_97 = arith.constant 0 : index
    %126 = vector.load %arg10[%c0_95, %c0_96, %c0_97] : memref<2x16x128xbf16, #tpu.memory_space<vmem>>, vector<1x16x128xbf16>
    %127 = vector.shape_cast %126 : vector<1x16x128xbf16> to vector<16x128xbf16>
    %128 = vector.shape_cast %125 : vector<16x128xbf16> to vector<1x16x128xbf16>
    tpu.vector_store %arg10[%c0_95, %c0_96, %c0_97], %128 {strides = array<i32>} : memref<2x16x128xbf16, #tpu.memory_space<vmem>>, vector<1x16x128xbf16>,
    %c1_98 = arith.constant 1 : index
    %c0_99 = arith.constant 0 : index
    %c0_100 = arith.constant 0 : index
    %129 = vector.load %arg0[%c1_98, %c0_99, %c0_100] : memref<2x20x1xf32, #tpu.memory_space<vmem>>, vector<1x20x1xf32>
    %130 = vector.shape_cast %129 : vector<1x20x1xf32> to vector<20x1xf32>
    %cst_101 = arith.constant 0.000000e+00 : f32
    %131 = vector.broadcast %cst_101 : f32 to vector<16x32xf32>
    %132 = vector.extract_strided_slice %130 {offsets = [0, 0], sizes = [16, 1], strides = [1, 1]} : vector<20x1xf32> to vector<16x1xf32>
    %c0_102 = arith.constant 0 : index
    %c0_103 = arith.constant 0 : index
    %133 = vector.load %arg1[%c0_102, %c0_103] : memref<5x32xf32, #tpu.memory_space<vmem>>, vector<1x32xf32>
    %134 = vector.broadcast %132 : vector<16x1xf32> to vector<16x32xf32>
    %135 = vector.broadcast %133 : vector<1x32xf32> to vector<16x32xf32>
    %136 = arith.mulf %134, %135 : vector<16x32xf32>
    %137 = arith.addf %131, %136 : vector<16x32xf32>
    %138 = vector.extract_strided_slice %130 {offsets = [1, 0], sizes = [16, 1], strides = [1, 1]} : vector<20x1xf32> to vector<16x1xf32>
    %c1_104 = arith.constant 1 : index
    %c0_105 = arith.constant 0 : index
    %139 = vector.load %arg1[%c1_104, %c0_105] : memref<5x32xf32, #tpu.memory_space<vmem>>, vector<1x32xf32>
    %140 = vector.broadcast %138 : vector<16x1xf32> to vector<16x32xf32>
    %141 = vector.broadcast %139 : vector<1x32xf32> to vector<16x32xf32>
    %142 = arith.mulf %140, %141 : vector<16x32xf32>
    %143 = arith.addf %137, %142 : vector<16x32xf32>
    %144 = vector.extract_strided_slice %130 {offsets = [2, 0], sizes = [16, 1], strides = [1, 1]} : vector<20x1xf32> to vector<16x1xf32>
    %c2_106 = arith.constant 2 : index
    %c0_107 = arith.constant 0 : index
    %145 = vector.load %arg1[%c2_106, %c0_107] : memref<5x32xf32, #tpu.memory_space<vmem>>, vector<1x32xf32>
    %146 = vector.broadcast %144 : vector<16x1xf32> to vector<16x32xf32>
    %147 = vector.broadcast %145 : vector<1x32xf32> to vector<16x32xf32>
    %148 = arith.mulf %146, %147 : vector<16x32xf32>
    %149 = arith.addf %143, %148 : vector<16x32xf32>
    %150 = vector.extract_strided_slice %130 {offsets = [3, 0], sizes = [16, 1], strides = [1, 1]} : vector<20x1xf32> to vector<16x1xf32>
    %c3_108 = arith.constant 3 : index
    %c0_109 = arith.constant 0 : index
    %151 = vector.load %arg1[%c3_108, %c0_109] : memref<5x32xf32, #tpu.memory_space<vmem>>, vector<1x32xf32>
    %152 = vector.broadcast %150 : vector<16x1xf32> to vector<16x32xf32>
    %153 = vector.broadcast %151 : vector<1x32xf32> to vector<16x32xf32>
    %154 = arith.mulf %152, %153 : vector<16x32xf32>
    %155 = arith.addf %149, %154 : vector<16x32xf32>
    %156 = vector.extract_strided_slice %130 {offsets = [4, 0], sizes = [16, 1], strides = [1, 1]} : vector<20x1xf32> to vector<16x1xf32>
    %c4_110 = arith.constant 4 : index
    %c0_111 = arith.constant 0 : index
    %157 = vector.load %arg1[%c4_110, %c0_111] : memref<5x32xf32, #tpu.memory_space<vmem>>, vector<1x32xf32>
    %158 = vector.broadcast %156 : vector<16x1xf32> to vector<16x32xf32>
    %159 = vector.broadcast %157 : vector<1x32xf32> to vector<16x32xf32>
    %160 = arith.mulf %158, %159 : vector<16x32xf32>
    %161 = arith.addf %155, %160 : vector<16x32xf32>
    %c0_112 = arith.constant 0 : index
    %c0_113 = arith.constant 0 : index
    %162 = vector.load %arg2[%c0_112, %c0_113] : memref<1x32xf32, #tpu.memory_space<vmem>>, vector<1x32xf32>
    %163 = vector.broadcast %162 : vector<1x32xf32> to vector<16x32xf32>
    %164 = arith.mulf %161, %163 : vector<16x32xf32>
    %c0_114 = arith.constant 0 : index
    %c0_115 = arith.constant 0 : index
    %165 = vector.load %arg3[%c0_114, %c0_115] : memref<1x32xf32, #tpu.memory_space<vmem>>, vector<1x32xf32>
    %166 = vector.broadcast %165 : vector<1x32xf32> to vector<16x32xf32>
    %167 = arith.addf %164, %166 : vector<16x32xf32>
    %cst_116 = arith.constant 0.000000e+00 : f32
    %168 = vector.broadcast %cst_116 : f32 to vector<16x32xf32>
    %169 = arith.maximumf %167, %168 : vector<16x32xf32>
    %c2_117 = arith.constant 2 : index
    %c0_118 = arith.constant 0 : index
    %170 = vector.load %arg11[%c2_117, %c0_118] : memref<20x32xf32, #tpu.memory_space<vmem>>, vector<16x32xf32>
    tpu.vector_store %arg11[%c2_117, %c0_118], %169 {strides = array<i32>} : memref<20x32xf32, #tpu.memory_space<vmem>>, vector<16x32xf32>,
    %cst_119 = arith.constant 0.000000e+00 : f32
    %171 = vector.broadcast %cst_119 : f32 to vector<16x64xf32>
    %c0_120 = arith.constant 0 : index
    %c0_121 = arith.constant 0 : index
    %172 = vector.load %arg11[%c0_120, %c0_121] : memref<20x32xf32, #tpu.memory_space<vmem>>, vector<16x32xf32>
    %173 = arith.truncf %172 : vector<16x32xf32> to vector<16x32xbf16>
    %c0_122 = arith.constant 0 : index
    %c0_123 = arith.constant 0 : index
    %c0_124 = arith.constant 0 : index
    %174 = vector.load %arg4[%c0_122, %c0_123, %c0_124] : memref<5x32x64xbf16, #tpu.memory_space<vmem>>, vector<1x32x64xbf16>
    %175 = vector.shape_cast %174 : vector<1x32x64xbf16> to vector<32x64xbf16>
    %cst_125 = arith.constant dense<0.000000e+00> : vector<16x64xf32>
    %176 = tpu.matmul %173, %175, %cst_125 {dimension_numbers = #tpu.dot_dimension_numbers<[1], [0], [0], [1], [0, 0, 1, 1], [], []>} : vector<16x32xbf16>, vector<32x64xbf16>, vector<16x64xf32> -> vector<16x64xf32>
    %177 = arith.addf %171, %176 : vector<16x64xf32>
    %c1_126 = arith.constant 1 : index
    %c0_127 = arith.constant 0 : index
    %178 = vector.load %arg11[%c1_126, %c0_127] : memref<20x32xf32, #tpu.memory_space<vmem>>, vector<16x32xf32>
    %179 = arith.truncf %178 : vector<16x32xf32> to vector<16x32xbf16>
    %c1_128 = arith.constant 1 : index
    %c0_129 = arith.constant 0 : index
    %c0_130 = arith.constant 0 : index
    %180 = vector.load %arg4[%c1_128, %c0_129, %c0_130] : memref<5x32x64xbf16, #tpu.memory_space<vmem>>, vector<1x32x64xbf16>
    %181 = vector.shape_cast %180 : vector<1x32x64xbf16> to vector<32x64xbf16>
    %cst_131 = arith.constant dense<0.000000e+00> : vector<16x64xf32>
    %182 = tpu.matmul %179, %181, %cst_131 {dimension_numbers = #tpu.dot_dimension_numbers<[1], [0], [0], [1], [0, 0, 1, 1], [], []>} : vector<16x32xbf16>, vector<32x64xbf16>, vector<16x64xf32> -> vector<16x64xf32>
    %183 = arith.addf %177, %182 : vector<16x64xf32>
    %c2_132 = arith.constant 2 : index
    %c0_133 = arith.constant 0 : index
    %184 = vector.load %arg11[%c2_132, %c0_133] : memref<20x32xf32, #tpu.memory_space<vmem>>, vector<16x32xf32>
    %185 = arith.truncf %184 : vector<16x32xf32> to vector<16x32xbf16>
    %c2_134 = arith.constant 2 : index
    %c0_135 = arith.constant 0 : index
    %c0_136 = arith.constant 0 : index
    %186 = vector.load %arg4[%c2_134, %c0_135, %c0_136] : memref<5x32x64xbf16, #tpu.memory_space<vmem>>, vector<1x32x64xbf16>
    %187 = vector.shape_cast %186 : vector<1x32x64xbf16> to vector<32x64xbf16>
    %cst_137 = arith.constant dense<0.000000e+00> : vector<16x64xf32>
    %188 = tpu.matmul %185, %187, %cst_137 {dimension_numbers = #tpu.dot_dimension_numbers<[1], [0], [0], [1], [0, 0, 1, 1], [], []>} : vector<16x32xbf16>, vector<32x64xbf16>, vector<16x64xf32> -> vector<16x64xf32>
    %189 = arith.addf %183, %188 : vector<16x64xf32>
    %c3_138 = arith.constant 3 : index
    %c0_139 = arith.constant 0 : index
    %190 = vector.load %arg11[%c3_138, %c0_139] : memref<20x32xf32, #tpu.memory_space<vmem>>, vector<16x32xf32>
    %191 = arith.truncf %190 : vector<16x32xf32> to vector<16x32xbf16>
    %c3_140 = arith.constant 3 : index
    %c0_141 = arith.constant 0 : index
    %c0_142 = arith.constant 0 : index
    %192 = vector.load %arg4[%c3_140, %c0_141, %c0_142] : memref<5x32x64xbf16, #tpu.memory_space<vmem>>, vector<1x32x64xbf16>
    %193 = vector.shape_cast %192 : vector<1x32x64xbf16> to vector<32x64xbf16>
    %cst_143 = arith.constant dense<0.000000e+00> : vector<16x64xf32>
    %194 = tpu.matmul %191, %193, %cst_143 {dimension_numbers = #tpu.dot_dimension_numbers<[1], [0], [0], [1], [0, 0, 1, 1], [], []>} : vector<16x32xbf16>, vector<32x64xbf16>, vector<16x64xf32> -> vector<16x64xf32>
    %195 = arith.addf %189, %194 : vector<16x64xf32>
    %c4_144 = arith.constant 4 : index
    %c0_145 = arith.constant 0 : index
    %196 = vector.load %arg11[%c4_144, %c0_145] : memref<20x32xf32, #tpu.memory_space<vmem>>, vector<16x32xf32>
    %197 = arith.truncf %196 : vector<16x32xf32> to vector<16x32xbf16>
    %c4_146 = arith.constant 4 : index
    %c0_147 = arith.constant 0 : index
    %c0_148 = arith.constant 0 : index
    %198 = vector.load %arg4[%c4_146, %c0_147, %c0_148] : memref<5x32x64xbf16, #tpu.memory_space<vmem>>, vector<1x32x64xbf16>
    %199 = vector.shape_cast %198 : vector<1x32x64xbf16> to vector<32x64xbf16>
    %cst_149 = arith.constant dense<0.000000e+00> : vector<16x64xf32>
    %200 = tpu.matmul %197, %199, %cst_149 {dimension_numbers = #tpu.dot_dimension_numbers<[1], [0], [0], [1], [0, 0, 1, 1], [], []>} : vector<16x32xbf16>, vector<32x64xbf16>, vector<16x64xf32> -> vector<16x64xf32>
    %201 = arith.addf %195, %200 : vector<16x64xf32>
    %c0_150 = arith.constant 0 : index
    %c0_151 = arith.constant 0 : index
    %202 = vector.load %arg5[%c0_150, %c0_151] : memref<1x64xf32, #tpu.memory_space<vmem>>, vector<1x64xf32>
    %203 = vector.broadcast %202 : vector<1x64xf32> to vector<16x64xf32>
    %204 = arith.mulf %201, %203 : vector<16x64xf32>
    %c0_152 = arith.constant 0 : index
    %c0_153 = arith.constant 0 : index
    %205 = vector.load %arg6[%c0_152, %c0_153] : memref<1x64xf32, #tpu.memory_space<vmem>>, vector<1x64xf32>
    %206 = vector.broadcast %205 : vector<1x64xf32> to vector<16x64xf32>
    %207 = arith.addf %204, %206 : vector<16x64xf32>
    %cst_154 = arith.constant 0.000000e+00 : f32
    %208 = vector.broadcast %cst_154 : f32 to vector<16x64xf32>
    %209 = arith.maximumf %207, %208 : vector<16x64xf32>
    %c2_155 = arith.constant 2 : index
    %c0_156 = arith.constant 0 : index
    %210 = vector.load %arg12[%c2_155, %c0_156] : memref<20x64xf32, #tpu.memory_space<vmem>>, vector<16x64xf32>
    tpu.vector_store %arg12[%c2_155, %c0_156], %209 {strides = array<i32>} : memref<20x64xf32, #tpu.memory_space<vmem>>, vector<16x64xf32>,
    %cst_157 = arith.constant 0.000000e+00 : f32
    %211 = vector.broadcast %cst_157 : f32 to vector<16x128xf32>
    %c0_158 = arith.constant 0 : index
    %c0_159 = arith.constant 0 : index
    %212 = vector.load %arg12[%c0_158, %c0_159] : memref<20x64xf32, #tpu.memory_space<vmem>>, vector<16x64xf32>
    %213 = arith.truncf %212 : vector<16x64xf32> to vector<16x64xbf16>
    %c0_160 = arith.constant 0 : index
    %c0_161 = arith.constant 0 : index
    %c0_162 = arith.constant 0 : index
    %214 = vector.load %arg7[%c0_160, %c0_161, %c0_162] : memref<5x64x128xbf16, #tpu.memory_space<vmem>>, vector<1x64x128xbf16>
    %215 = vector.shape_cast %214 : vector<1x64x128xbf16> to vector<64x128xbf16>
    %cst_163 = arith.constant dense<0.000000e+00> : vector<16x128xf32>
    %216 = tpu.matmul %213, %215, %cst_163 {dimension_numbers = #tpu.dot_dimension_numbers<[1], [0], [0], [1], [0, 0, 1, 1], [], []>} : vector<16x64xbf16>, vector<64x128xbf16>, vector<16x128xf32> -> vector<16x128xf32>
    %217 = arith.addf %211, %216 : vector<16x128xf32>
    %c1_164 = arith.constant 1 : index
    %c0_165 = arith.constant 0 : index
    %218 = vector.load %arg12[%c1_164, %c0_165] : memref<20x64xf32, #tpu.memory_space<vmem>>, vector<16x64xf32>
    %219 = arith.truncf %218 : vector<16x64xf32> to vector<16x64xbf16>
    %c1_166 = arith.constant 1 : index
    %c0_167 = arith.constant 0 : index
    %c0_168 = arith.constant 0 : index
    %220 = vector.load %arg7[%c1_166, %c0_167, %c0_168] : memref<5x64x128xbf16, #tpu.memory_space<vmem>>, vector<1x64x128xbf16>
    %221 = vector.shape_cast %220 : vector<1x64x128xbf16> to vector<64x128xbf16>
    %cst_169 = arith.constant dense<0.000000e+00> : vector<16x128xf32>
    %222 = tpu.matmul %219, %221, %cst_169 {dimension_numbers = #tpu.dot_dimension_numbers<[1], [0], [0], [1], [0, 0, 1, 1], [], []>} : vector<16x64xbf16>, vector<64x128xbf16>, vector<16x128xf32> -> vector<16x128xf32>
    %223 = arith.addf %217, %222 : vector<16x128xf32>
    %c2_170 = arith.constant 2 : index
    %c0_171 = arith.constant 0 : index
    %224 = vector.load %arg12[%c2_170, %c0_171] : memref<20x64xf32, #tpu.memory_space<vmem>>, vector<16x64xf32>
    %225 = arith.truncf %224 : vector<16x64xf32> to vector<16x64xbf16>
    %c2_172 = arith.constant 2 : index
    %c0_173 = arith.constant 0 : index
    %c0_174 = arith.constant 0 : index
    %226 = vector.load %arg7[%c2_172, %c0_173, %c0_174] : memref<5x64x128xbf16, #tpu.memory_space<vmem>>, vector<1x64x128xbf16>
    %227 = vector.shape_cast %226 : vector<1x64x128xbf16> to vector<64x128xbf16>
    %cst_175 = arith.constant dense<0.000000e+00> : vector<16x128xf32>
    %228 = tpu.matmul %225, %227, %cst_175 {dimension_numbers = #tpu.dot_dimension_numbers<[1], [0], [0], [1], [0, 0, 1, 1], [], []>} : vector<16x64xbf16>, vector<64x128xbf16>, vector<16x128xf32> -> vector<16x128xf32>
    %229 = arith.addf %223, %228 : vector<16x128xf32>
    %c3_176 = arith.constant 3 : index
    %c0_177 = arith.constant 0 : index
    %230 = vector.load %arg12[%c3_176, %c0_177] : memref<20x64xf32, #tpu.memory_space<vmem>>, vector<16x64xf32>
    %231 = arith.truncf %230 : vector<16x64xf32> to vector<16x64xbf16>
    %c3_178 = arith.constant 3 : index
    %c0_179 = arith.constant 0 : index
    %c0_180 = arith.constant 0 : index
    %232 = vector.load %arg7[%c3_178, %c0_179, %c0_180] : memref<5x64x128xbf16, #tpu.memory_space<vmem>>, vector<1x64x128xbf16>
    %233 = vector.shape_cast %232 : vector<1x64x128xbf16> to vector<64x128xbf16>
    %cst_181 = arith.constant dense<0.000000e+00> : vector<16x128xf32>
    %234 = tpu.matmul %231, %233, %cst_181 {dimension_numbers = #tpu.dot_dimension_numbers<[1], [0], [0], [1], [0, 0, 1, 1], [], []>} : vector<16x64xbf16>, vector<64x128xbf16>, vector<16x128xf32> -> vector<16x128xf32>
    %235 = arith.addf %229, %234 : vector<16x128xf32>
    %c4_182 = arith.constant 4 : index
    %c0_183 = arith.constant 0 : index
    %236 = vector.load %arg12[%c4_182, %c0_183] : memref<20x64xf32, #tpu.memory_space<vmem>>, vector<16x64xf32>
    %237 = arith.truncf %236 : vector<16x64xf32> to vector<16x64xbf16>
    %c4_184 = arith.constant 4 : index
    %c0_185 = arith.constant 0 : index
    %c0_186 = arith.constant 0 : index
    %238 = vector.load %arg7[%c4_184, %c0_185, %c0_186] : memref<5x64x128xbf16, #tpu.memory_space<vmem>>, vector<1x64x128xbf16>
    %239 = vector.shape_cast %238 : vector<1x64x128xbf16> to vector<64x128xbf16>
    %cst_187 = arith.constant dense<0.000000e+00> : vector<16x128xf32>
    %240 = tpu.matmul %237, %239, %cst_187 {dimension_numbers = #tpu.dot_dimension_numbers<[1], [0], [0], [1], [0, 0, 1, 1], [], []>} : vector<16x64xbf16>, vector<64x128xbf16>, vector<16x128xf32> -> vector<16x128xf32>
    %241 = arith.addf %235, %240 : vector<16x128xf32>
    %c0_188 = arith.constant 0 : index
    %c0_189 = arith.constant 0 : index
    %242 = vector.load %arg8[%c0_188, %c0_189] : memref<1x128xf32, #tpu.memory_space<vmem>>, vector<1x128xf32>
    %243 = vector.broadcast %242 : vector<1x128xf32> to vector<16x128xf32>
    %244 = arith.mulf %241, %243 : vector<16x128xf32>
    %c0_190 = arith.constant 0 : index
    %c0_191 = arith.constant 0 : index
    %245 = vector.load %arg9[%c0_190, %c0_191] : memref<1x128xf32, #tpu.memory_space<vmem>>, vector<1x128xf32>
    %246 = vector.broadcast %245 : vector<1x128xf32> to vector<16x128xf32>
    %247 = arith.addf %244, %246 : vector<16x128xf32>
    %cst_192 = arith.constant 0.000000e+00 : f32
    %248 = vector.broadcast %cst_192 : f32 to vector<16x128xf32>
    %249 = arith.maximumf %247, %248 : vector<16x128xf32>
    %250 = arith.truncf %249 : vector<16x128xf32> to vector<16x128xbf16>
    %c1_193 = arith.constant 1 : index
    %c0_194 = arith.constant 0 : index
    %c0_195 = arith.constant 0 : index
    %251 = vector.load %arg10[%c1_193, %c0_194, %c0_195] : memref<2x16x128xbf16, #tpu.memory_space<vmem>>, vector<1x16x128xbf16>
    %252 = vector.shape_cast %251 : vector<1x16x128xbf16> to vector<16x128xbf16>
    %253 = vector.shape_cast %250 : vector<16x128xbf16> to vector<1x16x128xbf16>
    tpu.vector_store %arg10[%c1_193, %c0_194, %c0_195], %253 {strides = array<i32>} : memref<2x16x128xbf16, #tpu.memory_space<vmem>>, vector<1x16x128xbf16>,
    return
  }
}

module attributes {stable_mosaic.version = 11 : i64} {
  func.func @lstm_bidir_kernel(%arg0: i32, %arg1: memref<32x128xbf16, #tpu.memory_space<vmem>>, %arg2: memref<1x128x128xbf16, #tpu.memory_space<vmem>>, %arg3: memref<1x32x128xbf16, #tpu.memory_space<vmem>>, %arg4: memref<1x1x128xf32, #tpu.memory_space<vmem>>, %arg5: memref<1x16x2x32xf32, #tpu.memory_space<vmem>>, %arg6: memref<32x128xf32, #tpu.memory_space<vmem>>, %arg7: memref<2x32xf32, #tpu.memory_space<vmem>>, %arg8: memref<2x32xf32, #tpu.memory_space<vmem>>) attributes {dimension_semantics = [#tpu.dimension_semantics<parallel>], iteration_bounds = array<i64: 2>, scalar_prefetch = 0 : i64, scratch_operands = 3 : i64, tpu.core_type = #tpu.core_type<tc>, window_params = [{pipeline_mode = #tpu.pipeline_mode<synchronous>, transform_indices = @transform_0, window_bounds = array<i64: 32, 128>}, {transform_indices = @transform_1, window_bounds = array<i64: 1, 128, 128>}, {transform_indices = @transform_2, window_bounds = array<i64: 1, 32, 128>}, {transform_indices = @transform_3, window_bounds = array<i64: 1, 1, 128>}, {transform_indices = @transform_4, window_bounds = array<i64: 1, 16, 2, 32>}]} {
    %c0 = arith.constant 0 : index
    %c0_0 = arith.constant 0 : index
    %0 = vector.load %arg1[%c0, %c0_0] : memref<32x128xbf16, #tpu.memory_space<vmem>>, vector<32x128xbf16>
    %c0_1 = arith.constant 0 : index
    %c0_2 = arith.constant 0 : index
    %c0_3 = arith.constant 0 : index
    %1 = vector.load %arg2[%c0_1, %c0_2, %c0_3] : memref<1x128x128xbf16, #tpu.memory_space<vmem>>, vector<1x128x128xbf16>
    %2 = vector.shape_cast %1 : vector<1x128x128xbf16> to vector<128x128xbf16>
    %cst = arith.constant dense<0.000000e+00> : vector<32x128xf32>
    %3 = tpu.matmul %0, %2, %cst {dimension_numbers = #tpu.dot_dimension_numbers<[1], [0], [0], [1], [0, 0, 1, 1], [], []>} : vector<32x128xbf16>, vector<128x128xbf16>, vector<32x128xf32> -> vector<32x128xf32>
    %c0_4 = arith.constant 0 : index
    %c0_5 = arith.constant 0 : index
    %c0_6 = arith.constant 0 : index
    %4 = vector.load %arg4[%c0_4, %c0_5, %c0_6] : memref<1x1x128xf32, #tpu.memory_space<vmem>>, vector<1x1x128xf32>
    %5 = vector.shape_cast %4 : vector<1x1x128xf32> to vector<1x128xf32>
    %6 = vector.broadcast %5 : vector<1x128xf32> to vector<32x128xf32>
    %7 = arith.addf %3, %6 : vector<32x128xf32>
    %c0_7 = arith.constant 0 : index
    %c0_8 = arith.constant 0 : index
    %8 = vector.load %arg6[%c0_7, %c0_8] : memref<32x128xf32, #tpu.memory_space<vmem>>, vector<32x128xf32>
    tpu.vector_store %arg6[%c0_7, %c0_8], %7 {strides = array<i32>} : memref<32x128xf32, #tpu.memory_space<vmem>>, vector<32x128xf32>,
    %cst_9 = arith.constant 0.000000e+00 : f32
    %9 = vector.broadcast %cst_9 : f32 to vector<2x32xf32>
    %c0_10 = arith.constant 0 : index
    %c0_11 = arith.constant 0 : index
    %10 = vector.load %arg7[%c0_10, %c0_11] : memref<2x32xf32, #tpu.memory_space<vmem>>, vector<2x32xf32>
    tpu.vector_store %arg7[%c0_10, %c0_11], %9 {strides = array<i32>} : memref<2x32xf32, #tpu.memory_space<vmem>>, vector<2x32xf32>,
    %cst_12 = arith.constant 0.000000e+00 : f32
    %11 = vector.broadcast %cst_12 : f32 to vector<2x32xf32>
    %c0_13 = arith.constant 0 : index
    %c0_14 = arith.constant 0 : index
    %12 = vector.load %arg8[%c0_13, %c0_14] : memref<2x32xf32, #tpu.memory_space<vmem>>, vector<2x32xf32>
    tpu.vector_store %arg8[%c0_13, %c0_14], %11 {strides = array<i32>} : memref<2x32xf32, #tpu.memory_space<vmem>>, vector<2x32xf32>,
    %c0_15 = arith.constant 0 : index
    %c0_16 = arith.constant 0 : index
    %c0_17 = arith.constant 0 : index
    %13 = vector.load %arg3[%c0_15, %c0_16, %c0_17] : memref<1x32x128xbf16, #tpu.memory_space<vmem>>, vector<1x32x128xbf16>
    %14 = vector.shape_cast %13 : vector<1x32x128xbf16> to vector<32x128xbf16>
    %c1_i32 = arith.constant 1 : i32
    %15 = arith.cmpi eq, %arg0, %c1_i32 : i32
    %c0_i32 = arith.constant 0 : i32
    %c16_i32 = arith.constant 16 : i32
    %16 = arith.addi %c0_i32, %c16_i32 : i32
    %c1_i32_18 = arith.constant 1 : i32
    scf.for %arg9 = %c0_i32 to %16 step %c1_i32_18  : i32 {
      %c15_i32 = arith.constant 15 : i32
      %17 = arith.subi %c15_i32, %arg9 : i32
      %18 = arith.select %15, %17, %arg9 : i32
      %c0_20 = arith.constant 0 : index
      %c0_21 = arith.constant 0 : index
      %19 = vector.load %arg7[%c0_20, %c0_21] : memref<2x32xf32, #tpu.memory_space<vmem>>, vector<2x32xf32>
      %c0_22 = arith.constant 0 : index
      %c0_23 = arith.constant 0 : index
      %20 = vector.load %arg8[%c0_22, %c0_23] : memref<2x32xf32, #tpu.memory_space<vmem>>, vector<2x32xf32>
      %c2_i32 = arith.constant 2 : i32
      %21 = arith.muli %18, %c2_i32 : i32
      %22 = arith.index_cast %21 : i32 to index
      %c0_24 = arith.constant 0 : index
      %23 = vector.load %arg6[%22, %c0_24] : memref<32x128xf32, #tpu.memory_space<vmem>>, vector<2x128xf32>
      %24 = arith.truncf %19 : vector<2x32xf32> to vector<2x32xbf16>
      %cst_25 = arith.constant dense<0.000000e+00> : vector<2x128xf32>
      %25 = tpu.matmul %24, %14, %cst_25 {dimension_numbers = #tpu.dot_dimension_numbers<[1], [0], [0], [1], [0, 0, 1, 1], [], []>} : vector<2x32xbf16>, vector<32x128xbf16>, vector<2x128xf32> -> vector<2x128xf32>
      %26 = arith.addf %23, %25 : vector<2x128xf32>
      %27 = vector.extract_strided_slice %26 {offsets = [0, 0], sizes = [2, 32], strides = [1, 1]} : vector<2x128xf32> to vector<2x32xf32>
      %cst_26 = arith.constant 5.000000e-01 : f32
      %28 = vector.broadcast %cst_26 : f32 to vector<2x32xf32>
      %29 = arith.mulf %28, %27 : vector<2x32xf32>
      %30 = math.tanh %29 : vector<2x32xf32>
      %cst_27 = arith.constant 1.000000e+00 : f32
      %31 = vector.broadcast %cst_27 : f32 to vector<2x32xf32>
      %32 = arith.addf %30, %31 : vector<2x32xf32>
      %cst_28 = arith.constant 5.000000e-01 : f32
      %33 = vector.broadcast %cst_28 : f32 to vector<2x32xf32>
      %34 = arith.mulf %33, %32 : vector<2x32xf32>
      %35 = vector.extract_strided_slice %26 {offsets = [0, 32], sizes = [2, 32], strides = [1, 1]} : vector<2x128xf32> to vector<2x32xf32>
      %cst_29 = arith.constant 5.000000e-01 : f32
      %36 = vector.broadcast %cst_29 : f32 to vector<2x32xf32>
      %37 = arith.mulf %36, %35 : vector<2x32xf32>
      %38 = math.tanh %37 : vector<2x32xf32>
      %cst_30 = arith.constant 1.000000e+00 : f32
      %39 = vector.broadcast %cst_30 : f32 to vector<2x32xf32>
      %40 = arith.addf %38, %39 : vector<2x32xf32>
      %cst_31 = arith.constant 5.000000e-01 : f32
      %41 = vector.broadcast %cst_31 : f32 to vector<2x32xf32>
      %42 = arith.mulf %41, %40 : vector<2x32xf32>
      %43 = vector.extract_strided_slice %26 {offsets = [0, 64], sizes = [2, 32], strides = [1, 1]} : vector<2x128xf32> to vector<2x32xf32>
      %44 = math.tanh %43 : vector<2x32xf32>
      %45 = vector.extract_strided_slice %26 {offsets = [0, 96], sizes = [2, 32], strides = [1, 1]} : vector<2x128xf32> to vector<2x32xf32>
      %cst_32 = arith.constant 5.000000e-01 : f32
      %46 = vector.broadcast %cst_32 : f32 to vector<2x32xf32>
      %47 = arith.mulf %46, %45 : vector<2x32xf32>
      %48 = math.tanh %47 : vector<2x32xf32>
      %cst_33 = arith.constant 1.000000e+00 : f32
      %49 = vector.broadcast %cst_33 : f32 to vector<2x32xf32>
      %50 = arith.addf %48, %49 : vector<2x32xf32>
      %cst_34 = arith.constant 5.000000e-01 : f32
      %51 = vector.broadcast %cst_34 : f32 to vector<2x32xf32>
      %52 = arith.mulf %51, %50 : vector<2x32xf32>
      %53 = arith.mulf %42, %20 : vector<2x32xf32>
      %54 = arith.mulf %34, %44 : vector<2x32xf32>
      %55 = arith.addf %53, %54 : vector<2x32xf32>
      %56 = math.tanh %55 : vector<2x32xf32>
      %57 = arith.mulf %52, %56 : vector<2x32xf32>
      %c0_35 = arith.constant 0 : index
      %c0_36 = arith.constant 0 : index
      %58 = vector.load %arg7[%c0_35, %c0_36] : memref<2x32xf32, #tpu.memory_space<vmem>>, vector<2x32xf32>
      tpu.vector_store %arg7[%c0_35, %c0_36], %57 {strides = array<i32>} : memref<2x32xf32, #tpu.memory_space<vmem>>, vector<2x32xf32>,
      %c0_37 = arith.constant 0 : index
      %c0_38 = arith.constant 0 : index
      %59 = vector.load %arg8[%c0_37, %c0_38] : memref<2x32xf32, #tpu.memory_space<vmem>>, vector<2x32xf32>
      tpu.vector_store %arg8[%c0_37, %c0_38], %55 {strides = array<i32>} : memref<2x32xf32, #tpu.memory_space<vmem>>, vector<2x32xf32>,
      %c0_39 = arith.constant 0 : index
      %60 = arith.index_cast %18 : i32 to index
      %c0_40 = arith.constant 0 : index
      %c0_41 = arith.constant 0 : index
      %61 = vector.load %arg5[%c0_39, %60, %c0_40, %c0_41] : memref<1x16x2x32xf32, #tpu.memory_space<vmem>>, vector<1x1x2x32xf32>
      %62 = vector.shape_cast %61 : vector<1x1x2x32xf32> to vector<2x32xf32>
      %63 = vector.shape_cast %57 : vector<2x32xf32> to vector<1x1x2x32xf32>
      tpu.vector_store %arg5[%c0_39, %60, %c0_40, %c0_41], %63 {strides = array<i32>} : memref<1x16x2x32xf32, #tpu.memory_space<vmem>>, vector<1x1x2x32xf32>,
    }
    %c16_i32_19 = arith.constant 16 : i32
    return
  }
  func.func @transform_0(%arg0: i32) -> (i32, i32) {
    %c0_i32 = arith.constant 0 : i32
    %c0_i32_0 = arith.constant 0 : i32
    %c0_i32_1 = arith.constant 0 : i32
    return %c0_i32, %c0_i32_0 : i32, i32
  }
  func.func @transform_1(%arg0: i32) -> (i32, i32, i32) {
    %c0_i32 = arith.constant 0 : i32
    %c0_i32_0 = arith.constant 0 : i32
    %c0_i32_1 = arith.constant 0 : i32
    return %arg0, %c0_i32, %c0_i32_0 : i32, i32, i32
  }
  func.func @transform_2(%arg0: i32) -> (i32, i32, i32) {
    %c0_i32 = arith.constant 0 : i32
    %c0_i32_0 = arith.constant 0 : i32
    %c0_i32_1 = arith.constant 0 : i32
    return %arg0, %c0_i32, %c0_i32_0 : i32, i32, i32
  }
  func.func @transform_3(%arg0: i32) -> (i32, i32, i32) {
    %c0_i32 = arith.constant 0 : i32
    %c0_i32_0 = arith.constant 0 : i32
    %c0_i32_1 = arith.constant 0 : i32
    return %arg0, %c0_i32, %c0_i32_0 : i32, i32, i32
  }
  func.func @transform_4(%arg0: i32) -> (i32, i32, i32, i32) {
    %c0_i32 = arith.constant 0 : i32
    %c0_i32_0 = arith.constant 0 : i32
    %c0_i32_1 = arith.constant 0 : i32
    %c0_i32_2 = arith.constant 0 : i32
    return %arg0, %c0_i32, %c0_i32_0, %c0_i32_1 : i32, i32, i32, i32
  }
}

module attributes {stable_mosaic.version = 11 : i64} {
  func.func @lstm_bidir_kernel(%arg0: i32, %arg1: memref<32x64xf32, #tpu.memory_space<vmem>>, %arg2: memref<1x64x128xbf16, #tpu.memory_space<vmem>>, %arg3: memref<1x32x128xbf16, #tpu.memory_space<vmem>>, %arg4: memref<1x1x128xf32, #tpu.memory_space<vmem>>, %arg5: memref<1x16x2x32xf32, #tpu.memory_space<vmem>>, %arg6: memref<32x128xf32, #tpu.memory_space<vmem>>, %arg7: memref<2x32xf32, #tpu.memory_space<vmem>>, %arg8: memref<2x32xf32, #tpu.memory_space<vmem>>) attributes {dimension_semantics = [#tpu.dimension_semantics<parallel>], iteration_bounds = array<i64: 2>, scalar_prefetch = 0 : i64, scratch_operands = 3 : i64, tpu.core_type = #tpu.core_type<tc>, window_params = [{pipeline_mode = #tpu.pipeline_mode<synchronous>, transform_indices = @transform_0, window_bounds = array<i64: 32, 64>}, {transform_indices = @transform_1, window_bounds = array<i64: 1, 64, 128>}, {transform_indices = @transform_2, window_bounds = array<i64: 1, 32, 128>}, {transform_indices = @transform_3, window_bounds = array<i64: 1, 1, 128>}, {transform_indices = @transform_4, window_bounds = array<i64: 1, 16, 2, 32>}]} {
    %c0 = arith.constant 0 : index
    %c0_0 = arith.constant 0 : index
    %0 = vector.load %arg1[%c0, %c0_0] : memref<32x64xf32, #tpu.memory_space<vmem>>, vector<32x64xf32>
    %1 = arith.truncf %0 : vector<32x64xf32> to vector<32x64xbf16>
    %c0_1 = arith.constant 0 : index
    %c0_2 = arith.constant 0 : index
    %c0_3 = arith.constant 0 : index
    %2 = vector.load %arg2[%c0_1, %c0_2, %c0_3] : memref<1x64x128xbf16, #tpu.memory_space<vmem>>, vector<1x64x128xbf16>
    %3 = vector.shape_cast %2 : vector<1x64x128xbf16> to vector<64x128xbf16>
    %cst = arith.constant dense<0.000000e+00> : vector<32x128xf32>
    %4 = tpu.matmul %1, %3, %cst {dimension_numbers = #tpu.dot_dimension_numbers<[1], [0], [0], [1], [0, 0, 1, 1], [], []>} : vector<32x64xbf16>, vector<64x128xbf16>, vector<32x128xf32> -> vector<32x128xf32>
    %c0_4 = arith.constant 0 : index
    %c0_5 = arith.constant 0 : index
    %c0_6 = arith.constant 0 : index
    %5 = vector.load %arg4[%c0_4, %c0_5, %c0_6] : memref<1x1x128xf32, #tpu.memory_space<vmem>>, vector<1x1x128xf32>
    %6 = vector.shape_cast %5 : vector<1x1x128xf32> to vector<1x128xf32>
    %7 = vector.broadcast %6 : vector<1x128xf32> to vector<32x128xf32>
    %8 = arith.addf %4, %7 : vector<32x128xf32>
    %c0_7 = arith.constant 0 : index
    %c0_8 = arith.constant 0 : index
    %9 = vector.load %arg6[%c0_7, %c0_8] : memref<32x128xf32, #tpu.memory_space<vmem>>, vector<32x128xf32>
    tpu.vector_store %arg6[%c0_7, %c0_8], %8 {strides = array<i32>} : memref<32x128xf32, #tpu.memory_space<vmem>>, vector<32x128xf32>,
    %cst_9 = arith.constant 0.000000e+00 : f32
    %10 = vector.broadcast %cst_9 : f32 to vector<2x32xf32>
    %c0_10 = arith.constant 0 : index
    %c0_11 = arith.constant 0 : index
    %11 = vector.load %arg7[%c0_10, %c0_11] : memref<2x32xf32, #tpu.memory_space<vmem>>, vector<2x32xf32>
    tpu.vector_store %arg7[%c0_10, %c0_11], %10 {strides = array<i32>} : memref<2x32xf32, #tpu.memory_space<vmem>>, vector<2x32xf32>,
    %cst_12 = arith.constant 0.000000e+00 : f32
    %12 = vector.broadcast %cst_12 : f32 to vector<2x32xf32>
    %c0_13 = arith.constant 0 : index
    %c0_14 = arith.constant 0 : index
    %13 = vector.load %arg8[%c0_13, %c0_14] : memref<2x32xf32, #tpu.memory_space<vmem>>, vector<2x32xf32>
    tpu.vector_store %arg8[%c0_13, %c0_14], %12 {strides = array<i32>} : memref<2x32xf32, #tpu.memory_space<vmem>>, vector<2x32xf32>,
    %c0_15 = arith.constant 0 : index
    %c0_16 = arith.constant 0 : index
    %c0_17 = arith.constant 0 : index
    %14 = vector.load %arg3[%c0_15, %c0_16, %c0_17] : memref<1x32x128xbf16, #tpu.memory_space<vmem>>, vector<1x32x128xbf16>
    %15 = vector.shape_cast %14 : vector<1x32x128xbf16> to vector<32x128xbf16>
    %c1_i32 = arith.constant 1 : i32
    %16 = arith.cmpi eq, %arg0, %c1_i32 : i32
    %c0_i32 = arith.constant 0 : i32
    %c16_i32 = arith.constant 16 : i32
    %17 = arith.addi %c0_i32, %c16_i32 : i32
    %c1_i32_18 = arith.constant 1 : i32
    scf.for %arg9 = %c0_i32 to %17 step %c1_i32_18  : i32 {
      %c15_i32 = arith.constant 15 : i32
      %18 = arith.subi %c15_i32, %arg9 : i32
      %19 = arith.select %16, %18, %arg9 : i32
      %c0_20 = arith.constant 0 : index
      %c0_21 = arith.constant 0 : index
      %20 = vector.load %arg7[%c0_20, %c0_21] : memref<2x32xf32, #tpu.memory_space<vmem>>, vector<2x32xf32>
      %c0_22 = arith.constant 0 : index
      %c0_23 = arith.constant 0 : index
      %21 = vector.load %arg8[%c0_22, %c0_23] : memref<2x32xf32, #tpu.memory_space<vmem>>, vector<2x32xf32>
      %c2_i32 = arith.constant 2 : i32
      %22 = arith.muli %19, %c2_i32 : i32
      %23 = arith.index_cast %22 : i32 to index
      %c0_24 = arith.constant 0 : index
      %24 = vector.load %arg6[%23, %c0_24] : memref<32x128xf32, #tpu.memory_space<vmem>>, vector<2x128xf32>
      %25 = arith.truncf %20 : vector<2x32xf32> to vector<2x32xbf16>
      %cst_25 = arith.constant dense<0.000000e+00> : vector<2x128xf32>
      %26 = tpu.matmul %25, %15, %cst_25 {dimension_numbers = #tpu.dot_dimension_numbers<[1], [0], [0], [1], [0, 0, 1, 1], [], []>} : vector<2x32xbf16>, vector<32x128xbf16>, vector<2x128xf32> -> vector<2x128xf32>
      %27 = arith.addf %24, %26 : vector<2x128xf32>
      %28 = vector.extract_strided_slice %27 {offsets = [0, 0], sizes = [2, 32], strides = [1, 1]} : vector<2x128xf32> to vector<2x32xf32>
      %cst_26 = arith.constant 5.000000e-01 : f32
      %29 = vector.broadcast %cst_26 : f32 to vector<2x32xf32>
      %30 = arith.mulf %29, %28 : vector<2x32xf32>
      %31 = math.tanh %30 : vector<2x32xf32>
      %cst_27 = arith.constant 1.000000e+00 : f32
      %32 = vector.broadcast %cst_27 : f32 to vector<2x32xf32>
      %33 = arith.addf %31, %32 : vector<2x32xf32>
      %cst_28 = arith.constant 5.000000e-01 : f32
      %34 = vector.broadcast %cst_28 : f32 to vector<2x32xf32>
      %35 = arith.mulf %34, %33 : vector<2x32xf32>
      %36 = vector.extract_strided_slice %27 {offsets = [0, 32], sizes = [2, 32], strides = [1, 1]} : vector<2x128xf32> to vector<2x32xf32>
      %cst_29 = arith.constant 5.000000e-01 : f32
      %37 = vector.broadcast %cst_29 : f32 to vector<2x32xf32>
      %38 = arith.mulf %37, %36 : vector<2x32xf32>
      %39 = math.tanh %38 : vector<2x32xf32>
      %cst_30 = arith.constant 1.000000e+00 : f32
      %40 = vector.broadcast %cst_30 : f32 to vector<2x32xf32>
      %41 = arith.addf %39, %40 : vector<2x32xf32>
      %cst_31 = arith.constant 5.000000e-01 : f32
      %42 = vector.broadcast %cst_31 : f32 to vector<2x32xf32>
      %43 = arith.mulf %42, %41 : vector<2x32xf32>
      %44 = vector.extract_strided_slice %27 {offsets = [0, 64], sizes = [2, 32], strides = [1, 1]} : vector<2x128xf32> to vector<2x32xf32>
      %45 = math.tanh %44 : vector<2x32xf32>
      %46 = vector.extract_strided_slice %27 {offsets = [0, 96], sizes = [2, 32], strides = [1, 1]} : vector<2x128xf32> to vector<2x32xf32>
      %cst_32 = arith.constant 5.000000e-01 : f32
      %47 = vector.broadcast %cst_32 : f32 to vector<2x32xf32>
      %48 = arith.mulf %47, %46 : vector<2x32xf32>
      %49 = math.tanh %48 : vector<2x32xf32>
      %cst_33 = arith.constant 1.000000e+00 : f32
      %50 = vector.broadcast %cst_33 : f32 to vector<2x32xf32>
      %51 = arith.addf %49, %50 : vector<2x32xf32>
      %cst_34 = arith.constant 5.000000e-01 : f32
      %52 = vector.broadcast %cst_34 : f32 to vector<2x32xf32>
      %53 = arith.mulf %52, %51 : vector<2x32xf32>
      %54 = arith.mulf %43, %21 : vector<2x32xf32>
      %55 = arith.mulf %35, %45 : vector<2x32xf32>
      %56 = arith.addf %54, %55 : vector<2x32xf32>
      %57 = math.tanh %56 : vector<2x32xf32>
      %58 = arith.mulf %53, %57 : vector<2x32xf32>
      %c0_35 = arith.constant 0 : index
      %c0_36 = arith.constant 0 : index
      %59 = vector.load %arg7[%c0_35, %c0_36] : memref<2x32xf32, #tpu.memory_space<vmem>>, vector<2x32xf32>
      tpu.vector_store %arg7[%c0_35, %c0_36], %58 {strides = array<i32>} : memref<2x32xf32, #tpu.memory_space<vmem>>, vector<2x32xf32>,
      %c0_37 = arith.constant 0 : index
      %c0_38 = arith.constant 0 : index
      %60 = vector.load %arg8[%c0_37, %c0_38] : memref<2x32xf32, #tpu.memory_space<vmem>>, vector<2x32xf32>
      tpu.vector_store %arg8[%c0_37, %c0_38], %56 {strides = array<i32>} : memref<2x32xf32, #tpu.memory_space<vmem>>, vector<2x32xf32>,
      %c0_39 = arith.constant 0 : index
      %61 = arith.index_cast %19 : i32 to index
      %c0_40 = arith.constant 0 : index
      %c0_41 = arith.constant 0 : index
      %62 = vector.load %arg5[%c0_39, %61, %c0_40, %c0_41] : memref<1x16x2x32xf32, #tpu.memory_space<vmem>>, vector<1x1x2x32xf32>
      %63 = vector.shape_cast %62 : vector<1x1x2x32xf32> to vector<2x32xf32>
      %64 = vector.shape_cast %58 : vector<2x32xf32> to vector<1x1x2x32xf32>
      tpu.vector_store %arg5[%c0_39, %61, %c0_40, %c0_41], %64 {strides = array<i32>} : memref<1x16x2x32xf32, #tpu.memory_space<vmem>>, vector<1x1x2x32xf32>,
    }
    %c16_i32_19 = arith.constant 16 : i32
    return
  }
  func.func @transform_0(%arg0: i32) -> (i32, i32) {
    %c0_i32 = arith.constant 0 : i32
    %c0_i32_0 = arith.constant 0 : i32
    %c0_i32_1 = arith.constant 0 : i32
    return %c0_i32, %c0_i32_0 : i32, i32
  }
  func.func @transform_1(%arg0: i32) -> (i32, i32, i32) {
    %c0_i32 = arith.constant 0 : i32
    %c0_i32_0 = arith.constant 0 : i32
    %c0_i32_1 = arith.constant 0 : i32
    return %arg0, %c0_i32, %c0_i32_0 : i32, i32, i32
  }
  func.func @transform_2(%arg0: i32) -> (i32, i32, i32) {
    %c0_i32 = arith.constant 0 : i32
    %c0_i32_0 = arith.constant 0 : i32
    %c0_i32_1 = arith.constant 0 : i32
    return %arg0, %c0_i32, %c0_i32_0 : i32, i32, i32
  }
  func.func @transform_3(%arg0: i32) -> (i32, i32, i32) {
    %c0_i32 = arith.constant 0 : i32
    %c0_i32_0 = arith.constant 0 : i32
    %c0_i32_1 = arith.constant 0 : i32
    return %arg0, %c0_i32, %c0_i32_0 : i32, i32, i32
  }
  func.func @transform_4(%arg0: i32) -> (i32, i32, i32, i32) {
    %c0_i32 = arith.constant 0 : i32
    %c0_i32_0 = arith.constant 0 : i32
    %c0_i32_1 = arith.constant 0 : i32
    %c0_i32_2 = arith.constant 0 : i32
    return %arg0, %c0_i32, %c0_i32_0, %c0_i32_1 : i32, i32, i32, i32
  }
}

module attributes {stable_mosaic.version = 11 : i64} {
  func.func @head_kernel(%arg0: memref<2x16x64xf32, #tpu.memory_space<vmem>>, %arg1: memref<1x64xf32, #tpu.memory_space<vmem>>, %arg2: memref<1x1xf32, #tpu.memory_space<vmem>>, %arg3: memref<64x32xbf16, #tpu.memory_space<vmem>>, %arg4: memref<1x32xf32, #tpu.memory_space<vmem>>, %arg5: memref<1x32xf32, #tpu.memory_space<vmem>>, %arg6: memref<1x1xf32, #tpu.memory_space<vmem>>, %arg7: memref<32x1xf32, #tpu.memory_space<vmem>>) attributes {dimension_semantics = [], scalar_prefetch = 0 : i64, scratch_operands = 0 : i64, tpu.core_type = #tpu.core_type<tc>} {
    %c0 = arith.constant 0 : index
    %c0_0 = arith.constant 0 : index
    %c0_1 = arith.constant 0 : index
    %0 = vector.load %arg0[%c0, %c0_0, %c0_1] : memref<2x16x64xf32, #tpu.memory_space<vmem>>, vector<2x16x64xf32>
    %c0_2 = arith.constant 0 : index
    %c0_3 = arith.constant 0 : index
    %1 = vector.load %arg1[%c0_2, %c0_3] : memref<1x64xf32, #tpu.memory_space<vmem>>, vector<1x64xf32>
    %2 = vector.shape_cast %1 : vector<1x64xf32> to vector<1x1x64xf32>
    %3 = vector.broadcast %2 : vector<1x1x64xf32> to vector<2x16x64xf32>
    %4 = arith.mulf %0, %3 : vector<2x16x64xf32>
    %cst = arith.constant dense<0.000000e+00> : vector<2x16xf32>
    %5 = vector.multi_reduction <add>, %4, %cst [2] : vector<2x16x64xf32> to vector<2x16xf32>
    %6 = vector.shape_cast %5 : vector<2x16xf32> to vector<2x16x1xf32>
    %c0_4 = arith.constant 0 : index
    %c0_5 = arith.constant 0 : index
    %7 = vector.load %arg2[%c0_4, %c0_5] : memref<1x1xf32, #tpu.memory_space<vmem>>, vector<1x1xf32>
    %8 = vector.shape_cast %7 : vector<1x1xf32> to vector<1x1x1xf32>
    %9 = vector.broadcast %8 : vector<1x1x1xf32> to vector<2x16x1xf32>
    %10 = arith.addf %6, %9 : vector<2x16x1xf32>
    %cst_6 = arith.constant 5.000000e-01 : f32
    %11 = vector.broadcast %cst_6 : f32 to vector<2x16x1xf32>
    %12 = arith.mulf %11, %10 : vector<2x16x1xf32>
    %13 = math.tanh %12 : vector<2x16x1xf32>
    %cst_7 = arith.constant 1.000000e+00 : f32
    %14 = vector.broadcast %cst_7 : f32 to vector<2x16x1xf32>
    %15 = arith.addf %13, %14 : vector<2x16x1xf32>
    %cst_8 = arith.constant 5.000000e-01 : f32
    %16 = vector.broadcast %cst_8 : f32 to vector<2x16x1xf32>
    %17 = arith.mulf %16, %15 : vector<2x16x1xf32>
    %cst_9 = arith.constant dense<0.000000e+00> : vector<2x1xf32>
    %18 = vector.multi_reduction <add>, %17, %cst_9 [1] : vector<2x16x1xf32> to vector<2x1xf32>
    %19 = vector.shape_cast %18 : vector<2x1xf32> to vector<2x1x1xf32>
    %cst_10 = arith.constant 9.99999993E-9 : f32
    %20 = vector.broadcast %cst_10 : f32 to vector<2x1x1xf32>
    %21 = arith.addf %19, %20 : vector<2x1x1xf32>
    %22 = vector.broadcast %21 : vector<2x1x1xf32> to vector<2x16x1xf32>
    %23 = arith.divf %17, %22 : vector<2x16x1xf32>
    %24 = vector.broadcast %23 : vector<2x16x1xf32> to vector<2x16x64xf32>
    %25 = arith.mulf %24, %0 : vector<2x16x64xf32>
    %26 = vector.shape_cast %25 : vector<2x16x64xf32> to vector<32x64xf32>
    %27 = arith.truncf %26 : vector<32x64xf32> to vector<32x64xbf16>
    %c0_11 = arith.constant 0 : index
    %c0_12 = arith.constant 0 : index
    %28 = vector.load %arg3[%c0_11, %c0_12] : memref<64x32xbf16, #tpu.memory_space<vmem>>, vector<64x32xbf16>
    %cst_13 = arith.constant dense<0.000000e+00> : vector<32x32xf32>
    %29 = tpu.matmul %27, %28, %cst_13 {dimension_numbers = #tpu.dot_dimension_numbers<[1], [0], [0], [1], [0, 0, 1, 1], [], []>} : vector<32x64xbf16>, vector<64x32xbf16>, vector<32x32xf32> -> vector<32x32xf32>
    %c0_14 = arith.constant 0 : index
    %c0_15 = arith.constant 0 : index
    %30 = vector.load %arg4[%c0_14, %c0_15] : memref<1x32xf32, #tpu.memory_space<vmem>>, vector<1x32xf32>
    %31 = vector.broadcast %30 : vector<1x32xf32> to vector<32x32xf32>
    %32 = arith.addf %29, %31 : vector<32x32xf32>
    %cst_16 = arith.constant 0.000000e+00 : f32
    %33 = vector.broadcast %cst_16 : f32 to vector<32x32xf32>
    %34 = arith.maximumf %32, %33 : vector<32x32xf32>
    %c0_17 = arith.constant 0 : index
    %c0_18 = arith.constant 0 : index
    %35 = vector.load %arg5[%c0_17, %c0_18] : memref<1x32xf32, #tpu.memory_space<vmem>>, vector<1x32xf32>
    %36 = vector.broadcast %35 : vector<1x32xf32> to vector<32x32xf32>
    %37 = arith.mulf %34, %36 : vector<32x32xf32>
    %cst_19 = arith.constant dense<0.000000e+00> : vector<32xf32>
    %38 = vector.multi_reduction <add>, %37, %cst_19 [1] : vector<32x32xf32> to vector<32xf32>
    %39 = vector.shape_cast %38 : vector<32xf32> to vector<32x1xf32>
    %c0_20 = arith.constant 0 : index
    %c0_21 = arith.constant 0 : index
    %40 = vector.load %arg6[%c0_20, %c0_21] : memref<1x1xf32, #tpu.memory_space<vmem>>, vector<1x1xf32>
    %41 = vector.broadcast %40 : vector<1x1xf32> to vector<32x1xf32>
    %42 = arith.addf %39, %41 : vector<32x1xf32>
    %cst_22 = arith.constant 5.000000e-01 : f32
    %43 = vector.broadcast %cst_22 : f32 to vector<32x1xf32>
    %44 = arith.mulf %43, %42 : vector<32x1xf32>
    %45 = math.tanh %44 : vector<32x1xf32>
    %cst_23 = arith.constant 1.000000e+00 : f32
    %46 = vector.broadcast %cst_23 : f32 to vector<32x1xf32>
    %47 = arith.addf %45, %46 : vector<32x1xf32>
    %cst_24 = arith.constant 5.000000e-01 : f32
    %48 = vector.broadcast %cst_24 : f32 to vector<32x1xf32>
    %49 = arith.mulf %48, %47 : vector<32x1xf32>
    %c0_25 = arith.constant 0 : index
    %c0_26 = arith.constant 0 : index
    %50 = vector.load %arg7[%c0_25, %c0_26] : memref<32x1xf32, #tpu.memory_space<vmem>>, vector<32x1xf32>
    tpu.vector_store %arg7[%c0_25, %c0_26], %49 {strides = array<i32>} : memref<32x1xf32, #tpu.memory_space<vmem>>, vector<32x1xf32>,
    return
  }
}

</mosaic_0001>

<bundles_post_ra>
// kernel: forward.7
= control target key start
LH: loop header
LB: loop body
LE: loop exit
PB: predicated region body
PF: predicated region fallthrough
CT: control target
= control target key end

     0   :  { %vm46_vm0 = vcmask 523264   ;;  %v352_v14 = vmov 0   ;;  %vm86_vm1 = vcmask 7168   ;;  %vm248_vm2 = vcmask 261120   ;;  %s474_s0 = inlined_call_operand.vmem [shape: f32[2,16,64], index: 0, kind: input, shape index: {}]   ;;  %s475_s1 = inlined_call_operand.vmem [shape: f32[1,64], index: 1, kind: input, shape index: {}]   ;;  %s476_s2 = inlined_call_operand.<no memory space> [shape: f32[1,1], index: 2, kind: input, shape index: {}]   ;;  %s477_s3 = inlined_call_operand.vmem [shape: bf16[64,32], index: 3, kind: input, shape index: {}]   ;;  %s478_s6 = inlined_call_operand.<no memory space> [shape: f32[1,1], index: 6, kind: input, shape index: {}]   ;;  %s479_s4 = inlined_call_operand.vmem [shape: f32[1,32], index: 4, kind: input, shape index: {}]   ;;  %s480_s5 = inlined_call_operand.vmem [shape: f32[1,32], index: 5, kind: input, shape index: {}]   ;;  %s481_s7 = inlined_call_operand.vmem [shape: f32[32,1], index: 7, kind: output, shape index: {}]  }
   0x1   :  { %v396_v0 = vld [vmem:[%s474_s0 + $0x10] sm:$0xff]  ;;  %v296_v1 = vld [vmem:[%s475_s1] ss:$0 sm:$0xff]  ;;  %v12_v3 = vstv %s476_s2  ;;  %v414_v6 = vld [vmem:[%s474_s0 + $0x18] sm:$0xff]  ;;  %327 = vset.pattern.permute.xlu1 %v352_v14  ;;  %326 = vset.pattern.permute.xlu0 %v352_v14 }
   0x2   :  { %v404_v2 = vld [vmem:[%s474_s0] sm:$0xff]  ;;  %v44_v4 = vmul.f32 %v296_v1, %v396_v0  ;;  %v419_v7 = vld [vmem:[%s474_s0 + $0x8] sm:$0xff]  ;;  %13 = vst [vmem:[#allocation2] sm:$0x1] %v12_v3  ;;  %v45_v8 = vmul.f32 %v296_v1, %v414_v6  ;;  %v328_v15 = vld [vmem:[%s477_s3 + $0x18] sm:$0xff]  }
   0x3   :  { %v42_v5 = vmul.f32 %v296_v1, %v404_v2  ;;  %v43_v9 = vmul.f32 %v296_v1, %v419_v7  ;;  %313 = vmatprep.subr.bf16.mxu0 %v328_v15  ;;  %v329_v61 = vld [vmem:[%s477_s3 + $0x10] sm:$0xff]   ;;  %v330_v3 = vld [vmem:[%s477_s3 + $0x8] sm:$0xff]  }
   0x4   :  { %v53_v10 = vsel %vm46_vm0, %v44_v4, 0.0  ;;  %v56_v12 = vsel %vm46_vm0, %v45_v8, 0.0  ;;  %314 = vmatpush3.bf16.msra.mxu0 %v328_v15  ;;  %v331_v8 = vld [vmem:[%s477_s3] sm:$0xff]  }
   0x5   :  { %v47_v11 = vsel %vm46_vm0, %v42_v5, 0.0  ;;  %54 = vadd.xlane.f32.xlu1 %v53_v10  ;;  %v50_v13 = vsel %vm46_vm0, %v43_v9, 0.0  ;;  %315 = vmatprep.subr.bf16.mxu0 %v329_v61 }
   0x6   :  { %48 = vadd.xlane.f32.xlu0 %v47_v11 }
   0x8   :  { %316 = vmatpush3.bf16.msra.mxu0 %v329_v61 }
   0x9   :  { %57 = vadd.xlane.f32.xlu1 %v56_v12  ;;  %v297_v16 = vld [vmem:[#allocation2] ss:$0 sm:$0xff]  ;;  %317 = vmatprep.subr.bf16.mxu0 %v330_v3 }
   0xa   :  { %51 = vadd.xlane.f32.xlu0 %v50_v13 }
   0xc   :  { %318 = vmatpush3.bf16.msra.mxu0 %v330_v3 }
   0xd   :  { %319 = vmatprep.subr.bf16.mxu0 %v331_v8 }
  0x10   :  { %320 = vmatpush3.bf16.msra.mxu0 %v331_v8 }
  0x8e   :  { %v55_v17 = vpop.xlane.xlu1 %54 }
  0x8f   :  { %v49_v18 = vpop.xlane.xlu0 %48  ;;  %v68_v19 = vadd.f32 %v297_v16, %v55_v17 }
  0x90   :  { %v66_v20 = vadd.f32 %v297_v16, %v49_v18 }
  0x91   :  { %v72_v21 = vmul.f32 0.5, %v68_v19 }
  0x92   :  { %v70_v22 = vmul.f32 0.5, %v66_v20  ;;  %v58_v23 = vpop.xlane.xlu1 %57  ;;  %v14_v20 = vstv %s478_s6 }
  0x93   :  { %v52_v24 = vpop.xlane.xlu0 %51  ;;  %332 = vtanh.f32 %v72_v21  ;;  %v69_v25 = vadd.f32 %v297_v16, %v58_v23  ;;  %15 = vst [vmem:[#allocation3] sm:$0x1] %v14_v20 }
  0x94   :  { %v67_v26 = vadd.f32 %v297_v16, %v52_v24  ;;  %334 = vtanh.f32 %v70_v22 }
  0x95   :  { %v73_v27 = vmul.f32 0.5, %v69_v25 }
  0x96   :  { %v71_v28 = vmul.f32 0.5, %v67_v26 }
  0x97   :  { %336 = vtanh.f32 %v73_v27  ;;  %v305_v27 = vld [vmem:[%s480_s5] ss:$0 sm:$0xff] }
  0x98   :  { %338 = vtanh.f32 %v71_v28 }
  0xa0   :  { %v333_v29 = vpop.eup %332 }
  0xa1   :  { %v335_v30 = vpop.eup %334  ;;  %v80_v31 = vadd.f32 1.0, %v333_v29 }
  0xa2   :  { %v78_v32 = vadd.f32 1.0, %v335_v30 }
  0xa3   :  { %v84_v33 = vmul.f32 0.5, %v80_v31 }
  0xa4   :  { %v337_v34 = vpop.eup %336  ;;  %v82_v37 = vmul.f32 0.5, %v78_v32 }
  0xa5   :  { %v339_v35 = vpop.eup %338  ;;  %v81_v36 = vadd.f32 1.0, %v337_v34  ;;  %v96_v39 = vsel %vm86_vm1, %v84_v33, 0.0 }
  0xa6   :  { %v79_v38 = vadd.f32 1.0, %v339_v35  ;;  %v87_v43 = vsel %vm86_vm1, %v82_v37, 0.0 }
  0xa7   :  { %v85_v40 = vmul.f32 0.5, %v81_v36 }
  0xa8   :  { %v83_v41 = vmul.f32 0.5, %v79_v38 }
  0xa9   :  { %v97_v42 = vsel %vm86_vm1, %v85_v40, 0.0 }
  0xaa   :  { %v98_v44 = vadd.f32 %v97_v42, %v96_v39  ;;  %v88_v45 = vsel %vm86_vm1, %v83_v41, 0.0  ;;  %v306_v39 = vld [vmem:[#allocation3] ss:$0 sm:$0xff] }
  0xab   :  { %v89_v46 = vadd.f32 %v88_v45, %v87_v43 }
  0xac   :  { %v99_v47 = vrot.slane %v98_v44, 4 }
  0xad   :  { %v90_v48 = vrot.slane %v89_v46, 4 }
  0xae   :  { %v100_v49 = vadd.f32 %v99_v47, %v98_v44 }
  0xaf   :  { %v91_v50 = vadd.f32 %v90_v48, %v89_v46 }
  0xb0   :  { %v101_v51 = vrot.slane %v100_v49, 2 }
  0xb1   :  { %v92_v52 = vrot.slane %v91_v50, 2 }
  0xb2   :  { %v102_v53 = vadd.f32 %v101_v51, %v100_v49 }
  0xb3   :  { %v93_v54 = vadd.f32 %v92_v52, %v91_v50 }
  0xb4   :  { %v103_v55 = vrot.slane %v102_v53, 1 }
  0xb5   :  { %v94_v56 = vrot.slane %v93_v54, 1 }
  0xb6   :  { %v104_v57 = vadd.f32 %v103_v55, %v102_v53 }
  0xb7   :  { %v95_v58 = vadd.f32 %v94_v56, %v93_v54 }
  0xb8   :  { %v106_v59 = vadd.f32 1e-08, %v104_v57 }
  0xb9   :  { %v105_v60 = vadd.f32 1e-08, %v95_v58 }
  0xbb   :  { %340 = vrcp.f32 %v105_v60 }
  0xbc   :  { %342 = vrcp.f32 %v106_v59 }
  0xc8   :  { %v341_v62 = vpop.eup %340 }
  0xc9   :  { %v109_v63 = vmul.f32 %v341_v62, %v83_v41  ;;  %v108_v1 = vmul.f32 %v341_v62, %v82_v37  ;;  %v343_v4 = vpop.eup %342 }
  0xca   :  { %v111_v5 = vmul.f32 %v343_v4, %v84_v33  ;;  %v112_v9 = vmul.f32 %v343_v4, %v85_v40 }
  0xcb   :  { %120 = vperm.xlu1 %327, %v109_v63   ;;  %115 = vperm.xlu0 %326, %v108_v1  }
  0xcf   :  { %125 = vperm.xlu1 %327, %v111_v5  }
  0xd3   :  { %130 = vperm.xlu1 %327, %v112_v9  }
 0x146   :  { %v121_v10 = vpop.permute.xlu1 %120  ;;  %v116_v11 = vpop.permute.xlu0 %115 }
 0x147   :  { %v134_v12 = vmul.f32 %v121_v10, %v419_v7  ;;  %v133_v13 = vmul.f32 %v116_v11, %v404_v2  ;;  %v298_v2 = vld [vmem:[%s479_s4] ss:$0 sm:$0xff] }
 0x149   :  { %v137_v14 = vpack.c.bf16 %v134_v12, %v133_v13 }
 0x14a   :  { %v126_v15 = vpop.permute.xlu1 %125 }
 0x14b   :  { %321 = vmatprep.mubr.msk.bf16.mxu0 %vm46_vm0, %v137_v14  ;;  %v135_v17 = vmul.f32 %v126_v15, %v396_v0 }
 0x14e   :  { %v131_v16 = vpop.permute.xlu1 %130 }
 0x14f   :  { %v136_v18 = vmul.f32 %v131_v16, %v414_v6 }
 0x151   :  { %v138_v19 = vpack.c.bf16 %v136_v18, %v135_v17 }
 0x153   :  { %322 = vmatmul.mubr.msk.bf16.vlgmr.msra.gmra.mxu0 %vm46_vm0, %v138_v19 }
 0x213   :  { %v323_v7 = vpop.f32.mrf.mxu0 }
 0x214   :  { %v227_v21 = vadd.f32 %v323_v7, %v298_v2 }
 0x215   :  { %v218_v22 = vpop.f32.mrf.mxu0 }
 0x216   :  { %v219_v23 = vadd.f32 %v298_v2, %v218_v22  ;;  %v235_v0 = vmax.f32 %v227_v21, 0.0 }
 0x217   :  { %v324_v24 = vpop.f32.mrf.mxu0 }
 0x218   :  { %v233_v25 = vmax.f32 %v219_v23, 0.0  ;;  %v230_v6 = vadd.f32 %v324_v24, %v298_v2  ;;  %v246_v33 = vmul.f32 %v305_v27, %v235_v0 }
 0x219   :  { %v221_v26 = vpop.f32.mrf.mxu0 }
 0x21a   :  { %v222_v28 = vadd.f32 %v298_v2, %v221_v26  ;;  %v244_v29 = vmul.f32 %v305_v27, %v233_v25  ;;  %v236_v30 = vmax.f32 %v230_v6, 0.0  ;;  %v255_v36 = vsel %vm248_vm2, %v246_v33, 0.0 }
 0x21c   :  { %v234_v31 = vmax.f32 %v222_v28, 0.0  ;;  %v249_v32 = vsel %vm248_vm2, %v244_v29, 0.0  ;;  %v247_v37 = vmul.f32 %v305_v27, %v236_v30 }
 0x21d   :  { %250 = vadd.xlane.f32.xlu1 %v249_v32 }
 0x21e   :  { %v245_v34 = vmul.f32 %v305_v27, %v234_v31  ;;  %v258_v38 = vsel %vm248_vm2, %v247_v37, 0.0 }
 0x220   :  { %v252_v35 = vsel %vm248_vm2, %v245_v34, 0.0 }
 0x221   :  { %253 = vadd.xlane.f32.xlu0 %v252_v35  ;;  %256 = vadd.xlane.f32.xlu1 %v255_v36 }
 0x225   :  { %259 = vadd.xlane.f32.xlu1 %v258_v38 }
 0x2a6   :  { %v251_v40 = vpop.xlane.xlu1 %250 }
 0x2a7   :  { %v268_v41 = vadd.f32 %v306_v39, %v251_v40 }
 0x2a9   :  { %v272_v42 = vmul.f32 0.5, %v268_v41 }
 0x2aa   :  { %v254_v43 = vpop.xlane.xlu0 %253  ;;  %v257_v44 = vpop.xlane.xlu1 %256 }
 0x2ab   :  { %344 = vtanh.f32 %v272_v42  ;;  %v269_v45 = vadd.f32 %v306_v39, %v254_v43  ;;  %v270_v46 = vadd.f32 %v306_v39, %v257_v44 }
 0x2ad   :  { %v273_v47 = vmul.f32 0.5, %v269_v45  ;;  %v274_v48 = vmul.f32 0.5, %v270_v46 }
 0x2ae   :  { %v260_v49 = vpop.xlane.xlu1 %259 }
 0x2af   :  { %346 = vtanh.f32 %v273_v47  ;;  %v271_v50 = vadd.f32 %v306_v39, %v260_v49 }
 0x2b0   :  { %348 = vtanh.f32 %v274_v48 }
 0x2b1   :  { %v275_v51 = vmul.f32 0.5, %v271_v50 }
 0x2b3   :  { %350 = vtanh.f32 %v275_v51 }
 0x2b8   :  { %v345_v52 = vpop.eup %344 }
 0x2b9   :  { %v280_v53 = vadd.f32 1.0, %v345_v52 }
 0x2bb   :  { %v284_v54 = vmul.f32 0.5, %v280_v53 }
 0x2bc   :  { %v347_v55 = vpop.eup %346 }
 0x2bd   :  { %v349_v56 = vpop.eup %348  ;;  %288 = vst.msk [vmem:[%s481_s7] sm:$0xff] %vm86_vm1, %v284_v54  ;;  %v281_v57 = vadd.f32 1.0, %v347_v55 }
 0x2be   :  { %v282_v58 = vadd.f32 1.0, %v349_v56 }
 0x2bf   :  { %v285_v59 = vmul.f32 0.5, %v281_v57 }
 0x2c0   :  { %v351_v60 = vpop.eup %350  ;;  %v286_v61 = vmul.f32 0.5, %v282_v58 }
 0x2c1   :  { %289 = vst.msk [vmem:[%s481_s7 + $0x8] sm:$0xff] %vm86_vm1, %v285_v59  ;;  %v283_v62 = vadd.f32 1.0, %v351_v60 }
 0x2c2   :  { %290 = vst.msk [vmem:[%s481_s7 + $0x10] sm:$0xff] %vm86_vm1, %v286_v61 }
 0x2c3   :  { %v287_v63 = vmul.f32 0.5, %v283_v62 }
 0x2c5   :  { %291 = vst.msk [vmem:[%s481_s7 + $0x18] sm:$0xff] %vm86_vm1, %v287_v63 }

// kernel: forward.6
= control target key start
LH: loop header
LB: loop body
LE: loop exit
PB: predicated region body
PF: predicated region fallthrough
CT: control target
= control target key end

     0   :  { %s675_s15 = smov 0   ;;  %s761_s0 = inlined_call_operand.vmem [shape: f32[32,64], index: 0, kind: input, shape index: {}]   ;;  %s762_s1 = inlined_call_operand.vmem [shape: bf16[2,64,128], index: 1, kind: input, shape index: {}]   ;;  %s763_s2 = inlined_call_operand.vmem [shape: bf16[2,32,128], index: 2, kind: input, shape index: {}]   ;;  %s764_s3 = inlined_call_operand.vmem [shape: f32[2,1,128], index: 3, kind: input, shape index: {}]   ;;  %s765_s4 = inlined_call_operand.vmem [shape: f32[2,16,2,32], index: 4, kind: output, shape index: {}]  }
   0x1 LB: > { %s681_s16 = sadd.s32 4294967295, %s638_s15   ;;  %p544_p0 = scmp.ge.s32.totalorder %s638_s15, 1  ;;  %s638_s15 = sphi %s675_s15, %s14_s15  }
   0x2   : > { %p180_p1 = scmp.lt.s32.totalorder %s638_s15, 3 }
   0x4   : > { %p181_p2 = pnand %p544_p0, %p180_p1 }
   0x5   : > { %p214_p3 = scmp.lt.s32.totalorder (!%p181_p2), %s681_s16, 1  ;;  %p345_p4 = scmp.eq.s32.totalorder (!%p181_p2), %s681_s16, 1 }
   0x6   : > { %184 = sbr.rel (%p181_p2) target bundleno = 933 (0x3a5), region = 36  ;;  %s731_s14 = smov (!%p181_p2), 0  }
   0xb   : > { %v233_v0 = vld [vmem:[%s761_s0] sm:$0xff]  ;;  %v234_v1 = vld [vmem:[%s761_s0 + $0x8] sm:$0xff]  ;;  %vm278_vm0 = vcmask 523264   ;;  %s693_s21 = scalar_select %p214_p3, %s681_s16, 1  ;;  %v235_v11 = vld [vmem:[%s761_s0 + $0x10] sm:$0xff]  ;;  %vm338_vm1 = vcmask 254976  }
   0xc   : > { %v237_v2 = vpack.c.bf16 %v234_v1, %v233_v0  ;;  %v236_v12 = vld [vmem:[%s761_s0 + $0x18] sm:$0xff]  ;;  %v644_v14 = vmov 0.0  }
   0xd   : > { %s564_s22 = sshll.u32 %s693_s21, 5  ;;  %s565_s23 = sshll.u32 %s693_s21, 4  ;;  %v238_v13 = vpack.c.bf16 %v236_v12, %v235_v11  ;;  %339 = vst.msk [vmem:[#allocation3] sm:$0x3] %vm338_vm1, %v644_v14  ;;  %340 = vst.msk [vmem:[#allocation4] sm:$0x3] %vm338_vm1, %v644_v14 }
   0xe   : > { %584 = vmatprep.mubr.msk.bf16.mxu0 %vm278_vm0, %v237_v2  ;;  %s218_s26 = scalar_lea.vmem %s762_s1, %s564_s22  ;;  %s223_s29 = scalar_lea.vmem %s763_s2, %s565_s23 }
   0xf   : > { %s707_s6 = scalar_lea.vmem %s765_s4, %s564_s22  ;;  %v618_v3 = vld [vmem:[%s218_s26 + $0x18] sm:$0xff]   ;;  %v709_v4 = vld [vmem:[%s223_s29] sm:$0xf]  ;;  %v711_v5 = vld [vmem:[%s223_s29 + $0x4] sm:$0xf]  ;;  %s226_s13 = scalar_lea.vmem %s764_s3, %s693_s21 }
  0x10   : > { %v713_v6 = vld [vmem:[%s223_s29 + $0x8] sm:$0xf]  ;;  %576 = vmatprep.subr.bf16.mxu0 %v618_v3  ;;  %v715_v7 = vld [vmem:[%s223_s29 + $0xc] sm:$0xf]  ;;  %v619_v8 = vld [vmem:[%s218_s26 + $0x10] sm:$0xff]  }
  0x11   : > { %577 = vmatpush3.bf16.msra.mxu0 %v618_v3  ;;  %v620_v9 = vld [vmem:[%s218_s26 + $0x8] sm:$0xff]   ;;  %v621_v10 = vld [vmem:[%s218_s26] sm:$0xff]  }
  0x12   : > { %578 = vmatprep.subr.bf16.mxu0 %v619_v8  ;;  %v551_v15 = vld [vmem:[%s226_s13] ss:$0 sm:$0xff] }
  0x15   : > { %579 = vmatpush3.bf16.msra.mxu0 %v619_v8 }
  0x16   : > { %580 = vmatprep.subr.bf16.mxu0 %v620_v9 }
  0x19   : > { %581 = vmatpush3.bf16.msra.mxu0 %v620_v9 }
  0x1a   : > { %582 = vmatprep.subr.bf16.mxu0 %v621_v10 }
  0x1d   : > { %583 = vmatpush3.bf16.msra.mxu0 %v621_v10 }
  0x20   : > { %585 = vmatmul.mubr.msk.bf16.vlgmr.msra.gmra.mxu0 %vm278_vm0, %v238_v13 }
  0xe0   : > { %v586_v16 = vpop.f32.mrf.mxu0 }
  0xe1   : > { %v328_v17 = vadd.f32 %v586_v16, %v551_v15 }
  0xe2   : > { %v319_v18 = vpop.f32.mrf.mxu0 }
  0xe3   : > { %336 = vst [vmem:[#allocation2 + $0x10] sm:$0xff] %v328_v17  ;;  %v320_v19 = vadd.f32 %v551_v15, %v319_v18 }
  0xe4   : > { %v587_v20 = vpop.f32.mrf.mxu0 }
  0xe5   : > { %334 = vst [vmem:[#allocation2] sm:$0xff] %v320_v19  ;;  %v331_v21 = vadd.f32 %v587_v20, %v551_v15 }
  0xe6   : > { %v322_v22 = vpop.f32.mrf.mxu0 }
  0xe7   : > { %337 = vst [vmem:[#allocation2 + $0x18] sm:$0xff] %v331_v21  ;;  %v323_v23 = vadd.f32 %v551_v15, %v322_v22 }
  0xe9   : > { %335 = vst [vmem:[#allocation2 + $0x8] sm:$0xff] %v323_v23 }
  0xea LB: >> { %v560_v24 = vcombine.low %v713_v6, %v715_v7  ;;  %v645_v25 = vmov 0.0   ;;  %vm646_vm2 = vmmov 0   ;;  %v559_v26 = vcombine.low %v709_v4, %v711_v5  ;;  %v354_v27 = vld [vmem:[#allocation3] sm:$0x3]  ;;  %s352_s17 = ssub.s32 15, %s642_s14  ;;  %s647_s20 = smov 64   ;;  %s642_s14 = sphi %s731_s14, %s351_s14  }
  0xeb   : >> { %588 = vmatprep.subr.bf16.mxu0 %v645_v25  ;;  %592 = vmatprep.mubr.msk.bf16.mxu0 %vm646_vm2, %v645_v25  ;;  %v359_v28 = vpack.c.bf16 %v354_v27, %v354_v27  ;;  %vm372_vm3 = vcmask 261120   ;;  %s767_s17 = smov (!%p345_p4, %s352_s17), %s642_s14  ;;  %v355_v36 = vld [vmem:[#allocation4] sm:$0x3]  ;;  %s648_s21 = smov 32  }
  0xec   : >> { %589 = vmatpush3.bf16.msra.mxu0 %v560_v24  ;;  %s558_s18 = sshll.u32 %s767_s17, 1  ;;  %s649_s22 = smov 96  }
  0xed   : >> { %590 = vmatprep.subr.bf16.mxu0 %v645_v25  ;;  %s357_s19 = scalar_lea.vmem [#allocation2], %s558_s18  ;;  %s453_s23 = scalar_lea.vmem %s707_s6, %s558_s18 }
  0xee   : >> { %s351_s14 = sadd.s32 1, %s642_s14  }
  0xef   : >> { %p348_p5 = scmp.ge.s32.totalorder %s351_s14, 16  }
  0xf0   : >> { %591 = vmatpush3.bf16.msra.mxu0 %v559_v26  ;;  %v358_v29 = vld [vmem:[%s357_s19] sm:$0x3] }
  0xf3   : >> { %593 = vmatmul.mubr.msk.bf16.vlgmr.msra.gmra.mxu0 %vm372_vm3, %v359_v28 }
 0x1b3   : >> { %v410_v30 = vpop.f32.mrf.mxu0 }
 0x1b4   : >> { %v416_v31 = vadd.f32 %v410_v30, %v358_v29 }
 0x1b5   : >> { %v594_v32 = vpop.f32.mrf.mxu0 }
 0x1b6   : >> { %622 = vtanh.f32 %v416_v31  ;;  %v417_v37 = vmul.f32 0.5, %v416_v31 }
 0x1b7   : >> { %v413_v33 = vpop.f32.mrf.mxu0 }
 0x1b8   : >> { %624 = vtanh.f32 %v417_v37 }
 0x1b9   : >> { %v595_v34 = vpop.f32.mrf.mxu0 }
 0x1c3   : >> { %v623_v35 = vpop.eup %622 }
 0x1c4   : >> { %428 = vrot.lane.b32.xlu0 %v623_v35, %s647_s20 }
 0x1c5   : >> { %v625_v38 = vpop.eup %624 }
 0x1c6   : >> { %v419_v39 = vadd.f32 1.0, %v625_v38 }
 0x1c8   : >> { %423 = vrot.lane.b32.xlu0 %v355_v36, %s648_s21  ;;  %v420_v40 = vmul.f32 0.5, %v419_v39 }
 0x236   : >> { %v429_v41 = vpop.permute.xlu0 %428 }
 0x237   : >> { %v431_v42 = vmul.f32 %v429_v41, %v420_v40 }
 0x239   : >> { %433 = vrot.lane.b32.xlu1 %v431_v42, %s648_s21 }
 0x23a   : >> { %v424_v43 = vpop.permute.xlu0 %423 }
 0x23b   : >> { %v426_v44 = vmul.f32 %v424_v43, %v420_v40 }
 0x2ab   : >> { %v434_v45 = vpop.permute.xlu1 %433 }
 0x2ac   : >> { %v436_v46 = vadd.f32 %v434_v45, %v426_v44 }
 0x2ae   : >> { %626 = vtanh.f32 %v436_v46 }
 0x2bb   : >> { %v627_v47 = vpop.eup %626 }
 0x2bc   : >> { %439 = vrot.lane.b32.xlu1 %v627_v47, %s647_s20 }
 0x2c0   : >> { %449 = vrot.lane.b32.xlu1 %v436_v46, %s649_s22 }
 0x32e   : >> { %v440_v48 = vpop.permute.xlu1 %439 }
 0x32f   : >> { %v442_v49 = vmul.f32 %v440_v48, %v420_v40 }
 0x331   : >> { %444 = vrot.lane.b32.xlu0 %v442_v49, %s648_s21 }
 0x332   : >> { %v450_v50 = vpop.permute.xlu1 %449 }
 0x333   : >> { %452 = vst.msk [vmem:[#allocation4] sm:$0x3] %vm338_vm1, %v450_v50 }
 0x3a0   : > { %350 = sbr.rel (!%p348_p5) target bundleno = 234 (0xea), region = 81 }
 0x3a3   : >> { %v445_v51 = vpop.permute.xlu0 %444 }
 0x3a4   : >> { %447 = vst.msk [vmem:[#allocation3] sm:$0x3] %vm338_vm1, %v445_v51  ;;  %454 = vst.msk [vmem:[%s453_s23] sm:$0x3] %vm338_vm1, %v445_v51 }
 0x3a5 PF: > { %s14_s15 = sadd.s32 1, %s638_s15  }
 0x3a6   : > { %p11_p6 = scmp.ge.s32.totalorder %s14_s15, 4  }
 0x3a8   :  { %13 = sbr.rel (!%p11_p6) target bundleno = 1 (0x1), region = 92 }

// kernel: forward.5
= control target key start
LH: loop header
LB: loop body
LE: loop exit
PB: predicated region body
PF: predicated region fallthrough
CT: control target
= control target key end

     0   :  { %s732_s15 = smov 0   ;;  %s811_s0 = inlined_call_operand.vmem [shape: bf16[32,128], index: 0, kind: input, shape index: {}]   ;;  %s812_s1 = inlined_call_operand.vmem [shape: bf16[2,128,128], index: 1, kind: input, shape index: {}]   ;;  %s813_s2 = inlined_call_operand.vmem [shape: bf16[2,32,128], index: 2, kind: input, shape index: {}]   ;;  %s814_s3 = inlined_call_operand.vmem [shape: f32[2,1,128], index: 3, kind: input, shape index: {}]   ;;  %s815_s4 = inlined_call_operand.vmem [shape: f32[2,16,2,32], index: 4, kind: output, shape index: {}]  }
   0x1 LB: > { %s738_s16 = sadd.s32 4294967295, %s695_s15   ;;  %p579_p0 = scmp.ge.s32.totalorder %s695_s15, 1  ;;  %s695_s15 = sphi %s732_s15, %s14_s15  }
   0x2   : > { %p180_p1 = scmp.lt.s32.totalorder %s695_s15, 3 }
   0x4   : > { %p181_p2 = pnand %p579_p0, %p180_p1 }
   0x5   : > { %p214_p3 = scmp.lt.s32.totalorder (!%p181_p2), %s738_s16, 1  ;;  %p380_p4 = scmp.eq.s32.totalorder (!%p181_p2), %s738_s16, 1 }
   0x6   : > { %184 = sbr.rel (%p181_p2) target bundleno = 949 (0x3b5), region = 36  ;;  %s781_s11 = smov (!%p181_p2), 0  }
   0xb   : > { %v677_v0 = vld [vmem:[%s811_s0] sm:$0xff]   ;;  %s747_s19 = scalar_select %p214_p3, %s738_s16, 1  ;;  %v678_v13 = vld [vmem:[%s811_s0 + $0x8] sm:$0xff]   ;;  %vm373_vm0 = vcmask 254976   ;;  %v701_v14 = vmov 0.0  }
   0xc   : > { %635 = vmatprep.mubr.bf16.mxu0 %v677_v0  ;;  %374 = vst.msk [vmem:[#allocation3] sm:$0x3] %vm373_vm0, %v701_v14  ;;  %375 = vst.msk [vmem:[#allocation4] sm:$0x3] %vm373_vm0, %v701_v14 }
   0xd   : > { %s603_s20 = sshll.u32 %s747_s19, 6  ;;  %s604_s21 = sshll.u32 %s747_s19, 4 }
   0xe   : > { %s218_s24 = scalar_lea.vmem %s812_s1, %s603_s20  ;;  %s223_s27 = scalar_lea.vmem %s813_s2, %s604_s21 }
   0xf   : > { %s605_s28 = sshll.u32 %s747_s19, 5  ;;  %v669_v1 = vld [vmem:[%s218_s24 + $0x38] sm:$0xff]   ;;  %v763_v2 = vld [vmem:[%s223_s27] sm:$0xf]  ;;  %v765_v3 = vld [vmem:[%s223_s27 + $0x4] sm:$0xf]  ;;  %s226_s10 = scalar_lea.vmem %s814_s3, %s747_s19 }
  0x10   : > { %s761_s5 = scalar_lea.vmem %s815_s4, %s605_s28  ;;  %v767_v4 = vld [vmem:[%s223_s27 + $0x8] sm:$0xf]  ;;  %619 = vmatprep.subr.bf16.mxu0 %v669_v1  ;;  %v769_v5 = vld [vmem:[%s223_s27 + $0xc] sm:$0xf]  ;;  %v670_v6 = vld [vmem:[%s218_s24 + $0x30] sm:$0xff]  }
  0x11   : > { %620 = vmatpush3.bf16.msra.mxu0 %v669_v1  ;;  %v671_v7 = vld [vmem:[%s218_s24 + $0x28] sm:$0xff]   ;;  %v672_v8 = vld [vmem:[%s218_s24 + $0x20] sm:$0xff]   ;;  %v673_v9 = vld [vmem:[%s218_s24 + $0x18] sm:$0xff]  }
  0x12   : > { %621 = vmatprep.subr.bf16.mxu0 %v670_v6  ;;  %v674_v10 = vld [vmem:[%s218_s24 + $0x10] sm:$0xff]   ;;  %v675_v11 = vld [vmem:[%s218_s24 + $0x8] sm:$0xff]   ;;  %v676_v12 = vld [vmem:[%s218_s24] sm:$0xff]  }
  0x13   : > { %v586_v15 = vld [vmem:[%s226_s10] ss:$0 sm:$0xff] }
  0x15   : > { %622 = vmatpush3.bf16.msra.mxu0 %v670_v6 }
  0x16   : > { %623 = vmatprep.subr.bf16.mxu0 %v671_v7 }
  0x19   : > { %624 = vmatpush3.bf16.msra.mxu0 %v671_v7 }
  0x1a   : > { %625 = vmatprep.subr.bf16.mxu0 %v672_v8 }
  0x1d   : > { %626 = vmatpush3.bf16.msra.mxu0 %v672_v8 }
  0x1e   : > { %627 = vmatprep.subr.bf16.mxu0 %v673_v9 }
  0x21   : > { %628 = vmatpush3.bf16.msra.mxu0 %v673_v9 }
  0x22   : > { %629 = vmatprep.subr.bf16.mxu0 %v674_v10 }
  0x25   : > { %630 = vmatpush3.bf16.msra.mxu0 %v674_v10 }
  0x26   : > { %631 = vmatprep.subr.bf16.mxu0 %v675_v11 }
  0x29   : > { %632 = vmatpush3.bf16.msra.mxu0 %v675_v11 }
  0x2a   : > { %633 = vmatprep.subr.bf16.mxu0 %v676_v12 }
  0x2d   : > { %634 = vmatpush3.bf16.msra.mxu0 %v676_v12 }
  0x30   : > { %636 = vmatmul.mubr.bf16.vlgmr.msra.gmra.mxu0 %v678_v13 }
  0xf0   : > { %v637_v16 = vpop.f32.mrf.mxu0 }
  0xf1   : > { %v363_v17 = vadd.f32 %v637_v16, %v586_v15 }
  0xf2   : > { %v354_v18 = vpop.f32.mrf.mxu0 }
  0xf3   : > { %371 = vst [vmem:[#allocation2 + $0x10] sm:$0xff] %v363_v17  ;;  %v355_v19 = vadd.f32 %v586_v15, %v354_v18 }
  0xf4   : > { %v638_v20 = vpop.f32.mrf.mxu0 }
  0xf5   : > { %369 = vst [vmem:[#allocation2] sm:$0xff] %v355_v19  ;;  %v366_v21 = vadd.f32 %v638_v20, %v586_v15 }
  0xf6   : > { %v357_v22 = vpop.f32.mrf.mxu0 }
  0xf7   : > { %372 = vst [vmem:[#allocation2 + $0x18] sm:$0xff] %v366_v21  ;;  %v358_v23 = vadd.f32 %v586_v15, %v357_v22 }
  0xf9   : > { %370 = vst [vmem:[#allocation2 + $0x8] sm:$0xff] %v358_v23 }
  0xfa LB: >> { %v599_v24 = vcombine.low %v767_v4, %v769_v5  ;;  %v702_v25 = vmov 0.0   ;;  %vm703_vm1 = vmmov 0   ;;  %v598_v26 = vcombine.low %v763_v2, %v765_v3  ;;  %v389_v27 = vld [vmem:[#allocation3] sm:$0x3]  ;;  %s387_s12 = ssub.s32 15, %s699_s11  ;;  %s704_s17 = smov 64   ;;  %s699_s11 = sphi %s781_s11, %s386_s11  }
  0xfb   : >> { %639 = vmatprep.subr.bf16.mxu0 %v702_v25  ;;  %643 = vmatprep.mubr.msk.bf16.mxu0 %vm703_vm1, %v702_v25  ;;  %v394_v28 = vpack.c.bf16 %v389_v27, %v389_v27  ;;  %vm407_vm2 = vcmask 261120   ;;  %s817_s12 = smov (!%p380_p4, %s387_s12), %s699_s11  ;;  %v390_v36 = vld [vmem:[#allocation4] sm:$0x3]  ;;  %s705_s18 = smov 32  }
  0xfc   : >> { %640 = vmatpush3.bf16.msra.mxu0 %v599_v24  ;;  %s597_s13 = sshll.u32 %s817_s12, 1  ;;  %s706_s19 = smov 96  }
  0xfd   : >> { %641 = vmatprep.subr.bf16.mxu0 %v702_v25  ;;  %s392_s14 = scalar_lea.vmem [#allocation2], %s597_s13  ;;  %s488_s20 = scalar_lea.vmem %s761_s5, %s597_s13 }
  0xfe   : >> { %s386_s11 = sadd.s32 1, %s699_s11  }
  0xff   : >> { %p383_p5 = scmp.ge.s32.totalorder %s386_s11, 16  }
 0x100   : >> { %642 = vmatpush3.bf16.msra.mxu0 %v598_v26  ;;  %v393_v29 = vld [vmem:[%s392_s14] sm:$0x3] }
 0x103   : >> { %644 = vmatmul.mubr.msk.bf16.vlgmr.msra.gmra.mxu0 %vm407_vm2, %v394_v28 }
 0x1c3   : >> { %v445_v30 = vpop.f32.mrf.mxu0 }
 0x1c4   : >> { %v451_v31 = vadd.f32 %v445_v30, %v393_v29 }
 0x1c5   : >> { %v645_v32 = vpop.f32.mrf.mxu0 }
 0x1c6   : >> { %679 = vtanh.f32 %v451_v31  ;;  %v452_v37 = vmul.f32 0.5, %v451_v31 }
 0x1c7   : >> { %v448_v33 = vpop.f32.mrf.mxu0 }
 0x1c8   : >> { %681 = vtanh.f32 %v452_v37 }
 0x1c9   : >> { %v646_v34 = vpop.f32.mrf.mxu0 }
 0x1d3   : >> { %v680_v35 = vpop.eup %679 }
 0x1d4   : >> { %463 = vrot.lane.b32.xlu0 %v680_v35, %s704_s17 }
 0x1d5   : >> { %v682_v38 = vpop.eup %681 }
 0x1d6   : >> { %v454_v39 = vadd.f32 1.0, %v682_v38 }
 0x1d8   : >> { %458 = vrot.lane.b32.xlu0 %v390_v36, %s705_s18  ;;  %v455_v40 = vmul.f32 0.5, %v454_v39 }
 0x246   : >> { %v464_v41 = vpop.permute.xlu0 %463 }
 0x247   : >> { %v466_v42 = vmul.f32 %v464_v41, %v455_v40 }
 0x249   : >> { %468 = vrot.lane.b32.xlu1 %v466_v42, %s705_s18 }
 0x24a   : >> { %v459_v43 = vpop.permute.xlu0 %458 }
 0x24b   : >> { %v461_v44 = vmul.f32 %v459_v43, %v455_v40 }
 0x2bb   : >> { %v469_v45 = vpop.permute.xlu1 %468 }
 0x2bc   : >> { %v471_v46 = vadd.f32 %v469_v45, %v461_v44 }
 0x2be   : >> { %683 = vtanh.f32 %v471_v46 }
 0x2cb   : >> { %v684_v47 = vpop.eup %683 }
 0x2cc   : >> { %474 = vrot.lane.b32.xlu1 %v684_v47, %s704_s17 }
 0x2d0   : >> { %484 = vrot.lane.b32.xlu1 %v471_v46, %s706_s19 }
 0x33e   : >> { %v475_v48 = vpop.permute.xlu1 %474 }
 0x33f   : >> { %v477_v49 = vmul.f32 %v475_v48, %v455_v40 }
 0x341   : >> { %479 = vrot.lane.b32.xlu0 %v477_v49, %s705_s18 }
 0x342   : >> { %v485_v50 = vpop.permute.xlu1 %484 }
 0x343   : >> { %487 = vst.msk [vmem:[#allocation4] sm:$0x3] %vm373_vm0, %v485_v50 }
 0x3b0   : > { %385 = sbr.rel (!%p383_p5) target bundleno = 250 (0xfa), region = 81 }
 0x3b3   : >> { %v480_v51 = vpop.permute.xlu0 %479 }
 0x3b4   : >> { %482 = vst.msk [vmem:[#allocation3] sm:$0x3] %vm373_vm0, %v480_v51  ;;  %489 = vst.msk [vmem:[%s488_s20] sm:$0x3] %vm373_vm0, %v480_v51 }
 0x3b5 PF: > { %s14_s15 = sadd.s32 1, %s695_s15  }
 0x3b6   : > { %p11_p6 = scmp.ge.s32.totalorder %s14_s15, 4  }
 0x3b8   :  { %13 = sbr.rel (!%p11_p6) target bundleno = 1 (0x1), region = 92 }

// kernel: forward.4
= control target key start
LH: loop header
LB: loop body
LE: loop exit
PB: predicated region body
PF: predicated region fallthrough
CT: control target
= control target key end

     0   :  { %15 = vsyncpa [#allocation5], 0  ;;  %s2760_s0 = inlined_call_operand.vmem [shape: f32[2,20,1], index: 0, kind: input, shape index: {}]   ;;  %s2761_s1 = inlined_call_operand.vmem [shape: f32[5,32], index: 1, kind: input, shape index: {}]   ;;  %s2762_s2 = inlined_call_operand.vmem [shape: f32[1,32], index: 2, kind: input, shape index: {}]   ;;  %s2763_s3 = inlined_call_operand.vmem [shape: f32[1,32], index: 3, kind: input, shape index: {}]   ;;  %s2764_s4 = inlined_call_operand.hbm [shape: bf16[5,32,64], index: 4, kind: input, shape index: {}]   ;;  %s2765_s5 = inlined_call_operand.vmem [shape: f32[1,64], index: 5, kind: input, shape index: {}]   ;;  %s2766_s6 = inlined_call_operand.vmem [shape: f32[1,64], index: 6, kind: input, shape index: {}]   ;;  %s2767_s7 = inlined_call_operand.hbm [shape: bf16[5,64,128], index: 7, kind: input, shape index: {}]   ;;  %s2768_s8 = inlined_call_operand.vmem [shape: f32[1,128], index: 8, kind: input, shape index: {}]   ;;  %s2769_s9 = inlined_call_operand.vmem [shape: f32[1,128], index: 9, kind: input, shape index: {}]   ;;  %s2770_s10 = inlined_call_operand.vmem [shape: bf16[2,16,128], index: 10, kind: output, shape index: {}]  }
   0x1   :  { %16 = vsyncpa [#allocation7], 0  ;;  %s2419_s13 = smov [#allocation4]  }
   0x2   :  { %s30_s14 = sshll.u32 %s2419_s13, 4  ;;  %s31_s14 = int_to_ptr.vmem [resolvable:$true] %s30_s14 }
   0x3   :  { %s2383_s15 = scalar_lea.vmem %s31_s14, 1280  ;;  %p2388_p1 = scmp.lt.s32.totalorder %s31_s14, %s31_s14 }
   0x4   :  { %p2384_p0 = scmp.ne.s32.totalorder %s31_s14, %s2383_s15  ;;  %p2389_p2 = scmp.lt.s32.totalorder %s2383_s15, %s2383_s15 }
   0x6   :  { %p2390_p3 = por %p2389_p2, %p2388_p1 }
   0x8   :  { %p2391_p4 = pnand %p2390_p3, %p2384_p0 }
   0xa   :  { %2394 = shalt.err (!%p2391_p4)
}
   0xb   :  { %s2420_s16 = smov 64   ;;  %s2421_s17 = smov 4  }
   0xc   :  { %36 = dma.hbm_to_vmem [thread:$0]  %s2764_s4, 1280, %s31_s14, [#allocation5], %s2420_s16, %s2420_s16, %s2421_s17  }
   0xd   :  { %s2422_s20 = smov [#allocation6]  }
   0xe   :  { %s46_s21 = sshll.u32 %s2422_s20, 4  ;;  %s47_s21 = int_to_ptr.vmem [resolvable:$true] %s46_s21 }
   0xf   :  { %s2403_s22 = scalar_lea.vmem %s47_s21, 2560  ;;  %p2408_p6 = scmp.lt.s32.totalorder %s47_s21, %s47_s21 }
  0x10   :  { %p2404_p5 = scmp.ne.s32.totalorder %s47_s21, %s2403_s22  ;;  %p2409_p7 = scmp.lt.s32.totalorder %s2403_s22, %s2403_s22 }
  0x12   :  { %p2410_p8 = por %p2409_p7, %p2408_p6 }
  0x14   :  { %p2411_p9 = pnand %p2410_p8, %p2404_p5 }
  0x16   :  { %2414 = shalt.err (!%p2411_p9)
}
  0x17   :  { %52 = dma.hbm_to_vmem [thread:$0]  %s2767_s7, 2560, %s47_s21, [#allocation7], %s2420_s16, %s2420_s16, %s2421_s17  }
  0x18   :  { %2415 = dma.done.wait [#allocation5], 1280  }
  0x19   :  { %2416 = vsyncadd [#allocation5], 4294966016 }
  0x1a   :  { %2417 = dma.done.wait [#allocation7], 2560  }
  0x1b   :  { %2418 = vsyncadd [#allocation7], 4294964736  ;;  %v2423_v0 = vmov 0   ;;  %v76_v1 = vld [vmem:[%s2760_s0 + $0x10] sm:$0xf]  ;;  %v74_v2 = vld [vmem:[%s2760_s0] sm:$0xff] }
  0x1c   :  { %2314 = vset.pattern.permute.xlu1 %v2423_v0  ;;  %2313 = vset.pattern.permute.xlu0 %v2423_v0  ;;  %v1953_v3 = vld [vmem:[%s2760_s0 + $0x18] sm:$0xff]  ;;  %v75_v4 = vld [vmem:[%s2760_s0 + $0x8] sm:$0xff]  ;;  %vm64_vm0 = vcmask 261120   ;;  %vm67_vm1 = vcmask 257024   ;;  %v2424_v5 = vmov 0.0   ;;  %v1954_v7 = vld [vmem:[%s2760_s0 + $0x20] sm:$0xff] }
  0x1d   :  { %99 = vperm.xlu1 %2314, %v76_v1   ;;  %80 = vperm.xlu0 %2313, %v74_v2   ;;  %65 = vst.msk [vmem:[#allocation2] sm:$0xff] %vm64_vm0, %v2424_v5  ;;  %66 = vst.msk [vmem:[#allocation2 + $0x8] sm:$0xff] %vm64_vm0, %v2424_v5  ;;  %v1955_v6 = vld [vmem:[%s2760_s0 + $0x28] sm:$0xf]  ;;  %v2316_v9 = vld [vmem:[#allocation4 + $0x28] sm:$0xff]   ;;  %vm2425_vm2 = vmmov 0  }
  0x1e   :  { %2106 = vmatprep.subr.bf16.mxu1 %v2424_v5  ;;  %2122 = vmatprep.subr.bf16.mxu0 %v2424_v5  ;;  %68 = vst.msk [vmem:[#allocation2 + $0x10] sm:$0xf] %vm67_vm1, %v2424_v5  ;;  %v2315_v8 = vld [vmem:[#allocation4 + $0x18] sm:$0xff]   ;;  %v2317_v10 = vld [vmem:[#allocation4 + $0x10] sm:$0xff]   ;;  %v2318_v11 = vld [vmem:[#allocation4 + $0x20] sm:$0xff]   ;;  %vm112_vm3 = vcmask 1046528  }
  0x1f   :  { %2110 = vmatprep.mubr.msk.bf16.mxu1 %vm2425_vm2, %v2424_v5  ;;  %2126 = vmatprep.mubr.msk.bf16.mxu0 %vm2425_vm2, %v2424_v5  ;;  %v2523_v12 = vld [vmem:[%s2761_s1 + $0x1] ss:$0 sm:$0xff]  ;;  %v2528_v13 = vld [vmem:[%s2761_s1 + $0x2] ss:$0 sm:$0xff]  ;;  %v2533_v16 = vld [vmem:[%s2761_s1 + $0x3] ss:$0 sm:$0xff] }
  0x20   :  { %2107 = vmatpush3.bf16.msra.mxu1 %v2315_v8  ;;  %2123 = vmatpush3.bf16.msra.mxu0 %v2316_v9  ;;  %v2540_v19 = vld [vmem:[%s2761_s1] ss:$0 sm:$0xff]  ;;  %v2545_v20 = vld [vmem:[%s2761_s1 + $0x4] ss:$0 sm:$0xff]  ;;  %vm133_vm4 = vcmask 1045504   ;;  %vm154_vm5 = vcmask 1044480  }
  0x21   :  { %996 = vperm.xlu1 %2314, %v1953_v3   ;;  %85 = vperm.xlu0 %2313, %v75_v4   ;;  %vm175_vm6 = vcmask 1043456   ;;  %v1905_v9 = vld [vmem:[%s2762_s2] ss:$0 sm:$0xff]  ;;  %vm69_vm7 = vcmask 523264   ;;  %vm72_vm8 = vcmask 519168  }
  0x22   :  { %2108 = vmatprep.subr.bf16.mxu1 %v2424_v5  ;;  %2124 = vmatprep.subr.bf16.mxu0 %v2424_v5  ;;  %70 = vst.msk [vmem:[#allocation3] sm:$0xff] %vm69_vm7, %v2424_v5  ;;  %71 = vst.msk [vmem:[#allocation3 + $0x8] sm:$0xff] %vm69_vm7, %v2424_v5 }
  0x23   :  { %73 = vst.msk [vmem:[#allocation3 + $0x10] sm:$0xf] %vm72_vm8, %v2424_v5 }
  0x24   :  { %2109 = vmatpush3.bf16.msra.mxu1 %v2317_v10  ;;  %2125 = vmatpush3.bf16.msra.mxu0 %v2318_v11 }
  0x25   :  { %1015 = vperm.xlu1 %2314, %v1955_v6   ;;  %1001 = vperm.xlu0 %2313, %v1954_v7  }
  0x26   :  { %2114 = vmatprep.subr.bf16.mxu1 %v2424_v5  ;;  %2138 = vmatprep.subr.bf16.mxu0 %v2424_v5 }
  0x98   :  { %v100_v14 = vpop.permute.xlu1 %99  ;;  %v81_v15 = vpop.permute.xlu0 %80 }
  0x99   :  { %v108_v17 = vmul.f32 %v2523_v12, %v100_v14  ;;  %v129_v18 = vmul.f32 %v2528_v13, %v100_v14  ;;  %v150_v21 = vmul.f32 %v2533_v16, %v100_v14  ;;  %v106_v22 = vmul.f32 %v2523_v12, %v81_v15 }
  0x9a   :  { %v171_v23 = vmul.f32 %v2545_v20, %v100_v14  ;;  %v92_v25 = vmul.f32 %v2540_v19, %v81_v15  ;;  %v127_v26 = vmul.f32 %v2528_v13, %v81_v15  ;;  %v148_v27 = vmul.f32 %v2533_v16, %v81_v15 }
  0x9b   :  { %v116_v24 = vrot.slane %v108_v17, 1  ;;  %v137_v30 = vrot.slane %v129_v18, 2  ;;  %v158_v34 = vrot.slane %v150_v21, 3  ;;  %v113_v35 = vrot.slane %v106_v22, 1 }
  0x9c   :  { %v997_v28 = vpop.permute.xlu1 %996  ;;  %v86_v29 = vpop.permute.xlu0 %85  ;;  %v169_v36 = vmul.f32 %v2545_v20, %v81_v15  ;;  %v179_v42 = vrot.slane %v171_v23, 4  ;;  %v134_v43 = vrot.slane %v127_v26, 2  ;;  %v155_v44 = vrot.slane %v148_v27, 3  ;;  %v1906_v23 = vld [vmem:[%s2763_s3] ss:$0 sm:$0xff] }
  0x9d   :  { %v107_v31 = vmul.f32 %v2523_v12, %v86_v29  ;;  %v128_v32 = vmul.f32 %v2528_v13, %v86_v29  ;;  %v149_v33 = vmul.f32 %v2533_v16, %v86_v29  ;;  %v170_v37 = vmul.f32 %v2545_v20, %v86_v29 }
  0x9e   :  { %v1022_v40 = vmul.f32 %v2523_v12, %v997_v28  ;;  %v1042_v41 = vmul.f32 %v2528_v13, %v997_v28  ;;  %v93_v45 = vmul.f32 %v2540_v19, %v86_v29  ;;  %v176_v51 = vrot.slane %v169_v36, 4 }
  0x9f   :  { %v114_v38 = vrot.slane %v107_v31, 1  ;;  %v135_v39 = vrot.slane %v128_v32, 2  ;;  %v156_v48 = vrot.slane %v149_v33, 3  ;;  %v177_v49 = vrot.slane %v170_v37, 4 }
  0xa0   :  { %v1016_v50 = vpop.permute.xlu1 %1015  ;;  %v1062_v54 = vmul.f32 %v2533_v16, %v997_v28  ;;  %v1028_v57 = vrot.slane %v1022_v40, 1  ;;  %v1048_v58 = vrot.slane %v1042_v41, 2  ;;  %v1082_v61 = vmul.f32 %v2545_v20, %v997_v28  ;;  %v1002_v63 = vpop.permute.xlu0 %1001 }
  0xa1   :  { %v115_v46 = vsel %vm112_vm3, %v113_v35, %v114_v38  ;;  %v117_v47 = vsel %vm112_vm3, %v114_v38, %v116_v24  ;;  %v136_v55 = vsel %vm133_vm4, %v134_v43, %v135_v39  ;;  %v138_v56 = vsel %vm133_vm4, %v135_v39, %v137_v30 }
  0xa2   :  { %v120_v52 = vadd.f32 %v115_v46, %v92_v25  ;;  %v121_v53 = vadd.f32 %v117_v47, %v93_v45  ;;  %v1024_v62 = vmul.f32 %v2523_v12, %v1016_v50  ;;  %v157_v0 = vsel %vm154_vm5, %v155_v44, %v156_v48 }
  0xa3   :  { %v159_v1 = vsel %vm154_vm5, %v156_v48, %v158_v34  ;;  %v178_v2 = vsel %vm175_vm6, %v176_v51, %v177_v49  ;;  %v1044_v3 = vmul.f32 %v2528_v13, %v1016_v50  ;;  %v180_v7 = vsel %vm175_vm6, %v177_v49, %v179_v42 }
  0xa4   :  { %v141_v59 = vadd.f32 %v136_v55, %v120_v52  ;;  %v142_v60 = vadd.f32 %v138_v56, %v121_v53  ;;  %v1068_v8 = vrot.slane %v1062_v54, 3  ;;  %v1031_v10 = vrot.slane %v1024_v62, 1  ;;  %v2319_v56 = vld [vmem:[#allocation4 + $0x8] sm:$0xff]  }
  0xa5   :  { %v1064_v11 = vmul.f32 %v2533_v16, %v1016_v50  ;;  %v1023_v14 = vmul.f32 %v2523_v12, %v1002_v63  ;;  %v1043_v15 = vmul.f32 %v2528_v13, %v1002_v63  ;;  %v1084_v21 = vmul.f32 %v2545_v20, %v1016_v50 }
  0xa6   :  { %v162_v4 = vadd.f32 %v157_v0, %v141_v59  ;;  %v163_v6 = vadd.f32 %v159_v1, %v142_v60  ;;  %v1063_v22 = vmul.f32 %v2533_v16, %v1002_v63  ;;  %v1051_v24 = vrot.slane %v1044_v3, 2 }
  0xa7   :  { %v1029_v25 = vrot.slane %v1023_v14, 1  ;;  %v1049_v26 = vrot.slane %v1043_v15, 2  ;;  %v1083_v27 = vmul.f32 %v2545_v20, %v1002_v63  ;;  %v1008_v12 = vmul.f32 %v2540_v19, %v997_v28 }
  0xa8   :  { %v183_v17 = vadd.f32 %v178_v2, %v162_v4  ;;  %v184_v18 = vadd.f32 %v180_v7, %v163_v6  ;;  %v1009_v13 = vmul.f32 %v2540_v19, %v1002_v63  ;;  %v1071_v31 = vrot.slane %v1064_v11, 3  ;;  %v2323_v11 = vld [vmem:[#allocation4 + $0x38] sm:$0xff]  }
  0xa9   :  { %v1030_v32 = vsel %vm112_vm3, %v1028_v57, %v1029_v25  ;;  %v1032_v16 = vsel %vm112_vm3, %v1029_v25, %v1031_v10  ;;  %v1069_v33 = vrot.slane %v1063_v22, 3  ;;  %v1091_v38 = vrot.slane %v1084_v21, 4  ;;  %v2320_v57 = vld [vmem:[#allocation4 + $0x48] sm:$0xff]   ;;  %v2322_v10 = vld [vmem:[#allocation4 + $0x40] sm:$0xff]   ;;  %v2329_v25 = vld [vmem:[#allocation6 + $0x28] sm:$0xff]  }
  0xaa   :  { %v192_v29 = vmul.f32 %v1905_v9, %v183_v17  ;;  %v193_v30 = vmul.f32 %v1905_v9, %v184_v18  ;;  %v1035_v36 = vadd.f32 %v1030_v32, %v1008_v12  ;;  %v1036_v37 = vadd.f32 %v1032_v16, %v1009_v13  ;;  %v2324_v17 = vld [vmem:[#allocation4 + $0x30] sm:$0xff]   ;;  %v2325_v21 = vld [vmem:[#allocation6 + $0x38] sm:$0xff]  }
  0xab   :  { %v1050_v39 = vsel %vm133_vm4, %v1048_v58, %v1049_v26  ;;  %v1052_v20 = vsel %vm133_vm4, %v1049_v26, %v1051_v24  ;;  %v1089_v40 = vrot.slane %v1083_v27, 4  ;;  %v1088_v43 = vrot.slane %v1082_v61, 4  ;;  %v2326_v22 = vld [vmem:[#allocation6 + $0x18] sm:$0xff]   ;;  %v2328_v24 = vld [vmem:[#allocation6 + $0x10] sm:$0xff]   ;;  %v2330_v26 = vld [vmem:[#allocation6 + $0x8] sm:$0xff]  }
  0xac   :  { %v201_v34 = vadd.f32 %v1906_v23, %v192_v29  ;;  %v202_v35 = vadd.f32 %v1906_v23, %v193_v30  ;;  %v1055_v42 = vadd.f32 %v1050_v39, %v1035_v36  ;;  %v1056_v19 = vadd.f32 %v1052_v20, %v1036_v37  ;;  %v2331_v27 = vld [vmem:[#allocation6 + $0x20] sm:$0xff]  }
  0xad   :  { %v1070_v44 = vsel %vm154_vm5, %v1068_v8, %v1069_v33  ;;  %v1072_v45 = vsel %vm154_vm5, %v1069_v33, %v1071_v31  ;;  %v1090_v48 = vsel %vm175_vm6, %v1088_v43, %v1089_v40  ;;  %v1092_v49 = vsel %vm175_vm6, %v1089_v40, %v1091_v38  ;;  %v2332_v29 = vld [vmem:[#allocation6] sm:$0xff]  }
  0xae   :  { %v203_v41 = vmax.f32 %v201_v34, 0.0  ;;  %v204_v28 = vmax.f32 %v202_v35, 0.0  ;;  %v1075_v46 = vadd.f32 %v1070_v44, %v1055_v42  ;;  %v1076_v47 = vadd.f32 %v1072_v45, %v1056_v19  ;;  %v2636_v45 = vld [vmem:[%s2765_s5] ss:$0 sm:$0xff] }
  0xb0   :  { %205 = vst.msk [vmem:[#allocation2 + $0x2] sm:$0xff] %vm64_vm0, %v203_v41  ;;  %206 = vst.msk [vmem:[#allocation2 + $0xa] sm:$0xff] %vm64_vm0, %v204_v28  ;;  %v1095_v50 = vadd.f32 %v1090_v48, %v1075_v46  ;;  %v1096_v51 = vadd.f32 %v1092_v49, %v1076_v47  ;;  %v2641_v49 = vld [vmem:[%s2766_s6] ss:$0 sm:$0xff] }
  0xb2   :  { %v1104_v52 = vmul.f32 %v1905_v9, %v1095_v50  ;;  %v1105_v53 = vmul.f32 %v1905_v9, %v1096_v51  ;;  %v2321_v9 = vld [vmem:[#allocation4] sm:$0xff]  }
  0xb4   :  { %v1113_v54 = vadd.f32 %v1906_v23, %v1104_v52  ;;  %v1114_v55 = vadd.f32 %v1906_v23, %v1105_v53  ;;  %v2327_v23 = vld [vmem:[#allocation6 + $0x30] sm:$0xff]  }
  0xb6   :  { %v1115_v61 = vmax.f32 %v1113_v54, 0.0  ;;  %v1116_v2 = vmax.f32 %v1114_v55, 0.0 }
  0xb7   :  { %v214_v58 = vld [vmem:[#allocation2 + $0x1] sm:$0xff]  ;;  %v215_v59 = vld [vmem:[#allocation2 + $0x9] sm:$0xff] }
  0xb8   :  { %v334_v60 = vld [vmem:[#allocation2 + $0x2] sm:$0xff]  ;;  %v216_v62 = vpack.c.bf16 %v215_v59, %v214_v58  ;;  %v335_v63 = vld [vmem:[#allocation2 + $0xa] sm:$0xff] }
  0xb9   :  { %v207_v0 = vld [vmem:[#allocation2] sm:$0xff]  ;;  %v208_v1 = vld [vmem:[#allocation2 + $0x8] sm:$0xff]  ;;  %v336_v3 = vpack.c.bf16 %v335_v63, %v334_v60 }
  0xba   :  { %v466_v4 = vld [vmem:[#allocation2 + $0x4] sm:$0xff]  ;;  %v467_v6 = vld [vmem:[#allocation2 + $0xc] sm:$0xff]  ;;  %2111 = vmatmul.mubr.msk.bf16.vlgmr.msra.gmra.mxu1 %vm64_vm0, %v216_v62  ;;  %v209_v14 = vpack.c.bf16 %v208_v1, %v207_v0  ;;  %v2334_v62 = vld [vmem:[#allocation6 + $0x78] sm:$0xff]  }
  0xbb   :  { %v400_v7 = vld [vmem:[#allocation2 + $0x3] sm:$0xff]  ;;  %v401_v8 = vld [vmem:[#allocation2 + $0xb] sm:$0xff]  ;;  %2127 = vmatmul.mubr.msk.bf16.vlgmr.msra.gmra.mxu0 %vm64_vm0, %v336_v3  ;;  %2115 = vmatpush3.bf16.msra.mxu1 %v2319_v56  ;;  %v468_v15 = vpack.c.bf16 %v467_v6, %v466_v4 }
  0xbc   :  { %1117 = vst.msk [vmem:[#allocation2 + $0x2] sm:$0xff] %vm64_vm0, %v1115_v61  ;;  %1118 = vst.msk [vmem:[#allocation2 + $0xa] sm:$0xff] %vm64_vm0, %v1116_v2  ;;  %2139 = vmatpush3.bf16.msra.mxu0 %v2320_v57  ;;  %2116 = vmatprep.subr.bf16.mxu1 %v2424_v5  ;;  %v402_v18 = vpack.c.bf16 %v401_v8, %v400_v7  ;;  %v2333_v61 = vld [vmem:[#allocation6 + $0x58] sm:$0xff]   ;;  %v2335_v4 = vld [vmem:[#allocation6 + $0x50] sm:$0xff]  }
  0xbd   :  { %2140 = vmatprep.subr.bf16.mxu0 %v2424_v5  ;;  %2118 = vmatprep.mubr.msk.bf16.mxu1 %vm2425_vm2, %v2424_v5  ;;  %v2336_v6 = vld [vmem:[#allocation6 + $0x70] sm:$0xff]   ;;  %v2337_v7 = vld [vmem:[#allocation6 + $0x48] sm:$0xff]  }
  0xbe   :  { %2142 = vmatprep.mubr.msk.bf16.mxu0 %vm2425_vm2, %v2424_v5  ;;  %v2338_v8 = vld [vmem:[#allocation6 + $0x68] sm:$0xff]  }
  0xbf   :  { %2117 = vmatpush3.bf16.msra.mxu1 %v2321_v9  ;;  %v2339_v9 = vld [vmem:[#allocation6 + $0x40] sm:$0xff]  }
  0xc0   :  { %2141 = vmatpush3.bf16.msra.mxu0 %v2322_v10  ;;  %2130 = vmatprep.subr.bf16.mxu1 %v2424_v5  ;;  %v2340_v10 = vld [vmem:[#allocation6 + $0x60] sm:$0xff]  }
  0xc1   :  { %2158 = vmatprep.subr.bf16.mxu0 %v2424_v5 }
  0xc2   :  { %2119 = vmatmul.mubr.msk.bf16.vlgmr.msra.gmra.mxu1 %vm64_vm0, %v209_v14 }
  0xc3   :  { %2143 = vmatmul.mubr.msk.bf16.vlgmr.msra.gmra.mxu0 %vm64_vm0, %v468_v15  ;;  %2131 = vmatpush3.bf16.msra.mxu1 %v2323_v11 }
  0xc4   :  { %2132 = vmatprep.subr.bf16.mxu1 %v2424_v5  ;;  %2134 = vmatprep.mubr.msk.bf16.mxu1 %vm2425_vm2, %v2424_v5 }
  0xc5   :  { %2166 = vmatprep.mubr.msk.bf16.mxu0 %vm2425_vm2, %v2424_v5  ;;  %2159 = vmatpush3.bf16.msra.mxu0 %v2326_v22 }
  0xc6   :  { %2160 = vmatprep.subr.bf16.mxu0 %v2424_v5 }
  0xc7   :  { %2133 = vmatpush3.bf16.msra.mxu1 %v2324_v17 }
  0xc8   :  { %2146 = vmatprep.subr.bf16.mxu1 %v2424_v5 }
  0xc9   :  { %2161 = vmatpush3.bf16.msra.mxu0 %v2328_v24  ;;  %v2343_v24 = vld [vmem:[#allocation6 + $0x90] sm:$0xff]  }
  0xca   :  { %2135 = vmatmul.mubr.msk.bf16.vlgmr.msra.gmra.mxu1 %vm64_vm0, %v402_v18  ;;  %2162 = vmatprep.subr.bf16.mxu0 %v2424_v5  ;;  %v2341_v18 = vld [vmem:[#allocation6 + $0x98] sm:$0xff]  }
  0xcb   :  { %2154 = vmatprep.mubr.msk.bf16.mxu1 %vm2425_vm2, %v2424_v5  ;;  %2147 = vmatpush3.bf16.msra.mxu1 %v2325_v21  ;;  %v2342_v21 = vld [vmem:[#allocation4 + $0x18] sm:$0xff]  }
  0xcc   :  { %2148 = vmatprep.subr.bf16.mxu1 %v2424_v5 }
  0xcd   :  { %2163 = vmatpush3.bf16.msra.mxu0 %v2330_v26  ;;  %v1126_v26 = vld [vmem:[#allocation2 + $0x1] sm:$0xff] }
  0xce   :  { %2164 = vmatprep.subr.bf16.mxu0 %v2424_v5 }
  0xcf   :  { %2149 = vmatpush3.bf16.msra.mxu1 %v2327_v23 }
  0xd0   :  { %2150 = vmatprep.subr.bf16.mxu1 %v2424_v5 }
  0xd1   :  { %2165 = vmatpush3.bf16.msra.mxu0 %v2332_v29  ;;  %v2345_v29 = vld [vmem:[#allocation6 + $0x88] sm:$0xff]  }
  0xd2   :  { %2182 = vmatprep.subr.bf16.mxu0 %v2424_v5 }
  0xd3   :  { %2151 = vmatpush3.bf16.msra.mxu1 %v2329_v25  ;;  %v2344_v25 = vld [vmem:[#allocation4 + $0x10] sm:$0xff]  }
  0xd4   :  { %2152 = vmatprep.subr.bf16.mxu1 %v2424_v5 }
  0xd7   :  { %2153 = vmatpush3.bf16.msra.mxu1 %v2331_v27  ;;  %v1127_v27 = vld [vmem:[#allocation2 + $0x9] sm:$0xff] }
  0xd8   :  { %2170 = vmatprep.subr.bf16.mxu1 %v2424_v5 }
 0x17a   :  { %v271_v30 = vpop.f32.mrf.mxu1 }
 0x17b   :  { %v391_v12 = vpop.f32.mrf.mxu0 }
 0x17c   :  { %v2112_v13 = vpop.f32.mrf.mxu1 }
 0x17d   :  { %v2128_v31 = vpop.f32.mrf.mxu0  ;;  %v2347_v13 = vld [vmem:[#allocation6 + $0x80] sm:$0xff]  }
 0x17e   :  { %v274_v32 = vpop.f32.mrf.mxu1  ;;  %v2348_v31 = vld [vmem:[#allocation4] sm:$0xff]  }
 0x17f   :  { %v394_v16 = vpop.f32.mrf.mxu0 }
 0x180   :  { %v2113_v33 = vpop.f32.mrf.mxu1 }
 0x181   :  { %v2129_v34 = vpop.f32.mrf.mxu0 }
 0x182   :  { %v327_v35 = vpop.f32.mrf.mxu1  ;;  %v1120_v34 = vld [vmem:[#allocation2 + $0x8] sm:$0xff] }
 0x183   :  { %v523_v36 = vpop.f32.mrf.mxu0  ;;  %v328_v38 = vadd.f32 %v327_v35, %v271_v30  ;;  %v2346_v30 = vld [vmem:[#allocation4 + $0x8] sm:$0xff]  }
 0x184   :  { %v2120_v37 = vpop.f32.mrf.mxu1  ;;  %v2349_v35 = vld [vmem:[#allocation4 + $0x28] sm:$0xff]  }
 0x185   :  { %v2144_v39 = vpop.f32.mrf.mxu0  ;;  %v398_v19 = vadd.f32 %v391_v12, %v328_v38  ;;  %v1128_v12 = vpack.c.bf16 %v1127_v27, %v1126_v26  ;;  %v2712_v27 = vld [vmem:[%s2768_s8] ss:$0 sm:$0xff] }
 0x186   :  { %v330_v20 = vpop.f32.mrf.mxu1  ;;  %v2351_v39 = vld [vmem:[#allocation4 + $0x20] sm:$0xff]  }
 0x187   :  { %v526_v40 = vpop.f32.mrf.mxu0  ;;  %v331_v28 = vadd.f32 %v330_v20, %v274_v32  ;;  %v1119_v32 = vld [vmem:[#allocation2] sm:$0xff] }
 0x188   :  { %v2121_v41 = vpop.f32.mrf.mxu1  ;;  %v1121_v38 = vpack.c.bf16 %v1120_v34, %v1119_v32  ;;  %v2352_v20 = vld [vmem:[#allocation4 + $0x30] sm:$0xff]  }
 0x189   :  { %v2145_v42 = vpop.f32.mrf.mxu0  ;;  %v399_v48 = vadd.f32 %v394_v16, %v331_v28  ;;  %v1246_v41 = vld [vmem:[#allocation2 + $0xa] sm:$0xff] }
 0x18a   :  { %v457_v43 = vpop.f32.mrf.mxu1  ;;  %v1310_v28 = vld [vmem:[#allocation2 + $0x3] sm:$0xff]  ;;  %v1311_v42 = vld [vmem:[#allocation2 + $0xb] sm:$0xff] }
 0x18b   :  { %v464_v44 = vadd.f32 %v457_v43, %v398_v19  ;;  %v2353_v19 = vld [vmem:[#allocation4 + $0x48] sm:$0xff]  }
 0x18c   :  { %v2136_v46 = vpop.f32.mrf.mxu1 }
 0x18d   :  { %v530_v47 = vadd.f32 %v523_v36, %v464_v44  ;;  %v2350_v36 = vld [vmem:[#allocation4 + $0x38] sm:$0xff]   ;;  %v1312_v44 = vpack.c.bf16 %v1311_v42, %v1310_v28  ;;  %v2354_v46 = vld [vmem:[#allocation4 + $0x40] sm:$0xff]  }
 0x18e   :  { %v460_v50 = vpop.f32.mrf.mxu1 }
 0x18f   :  { %v539_v51 = vmul.f32 %v2636_v45, %v530_v47  ;;  %v465_v52 = vadd.f32 %v460_v50, %v399_v48  ;;  %v1375_v47 = vld [vmem:[#allocation2 + $0x4] sm:$0xff]  ;;  %v1376_v48 = vld [vmem:[#allocation2 + $0xc] sm:$0xff] }
 0x190   :  { %v2137_v53 = vpop.f32.mrf.mxu1  ;;  %v1377_v50 = vpack.c.bf16 %v1376_v48, %v1375_v47 }
 0x191   :  { %v548_v54 = vadd.f32 %v2641_v49, %v539_v51  ;;  %v531_v55 = vadd.f32 %v526_v40, %v465_v52  ;;  %v1245_v40 = vld [vmem:[#allocation2 + $0x2] sm:$0xff]  ;;  %v2355_v51 = vld [vmem:[#allocation6 + $0x38] sm:$0xff]   ;;  %v2357_v53 = vld [vmem:[#allocation6 + $0x30] sm:$0xff]  }
 0x192   :  { %v1247_v43 = vpack.c.bf16 %v1246_v41, %v1245_v40  ;;  %v2356_v52 = vld [vmem:[#allocation6 + $0x18] sm:$0xff]  }
 0x193   :  { %v550_v56 = vmax.f32 %v548_v54, 0.0  ;;  %v540_v57 = vmul.f32 %v2636_v45, %v531_v55  ;;  %v2358_v54 = vld [vmem:[#allocation6 + $0x10] sm:$0xff]   ;;  %v2359_v55 = vld [vmem:[#allocation6 + $0x28] sm:$0xff]  }
 0x195   :  { %552 = vst.msk [vmem:[#allocation3 + $0x2] sm:$0xff] %vm69_vm7, %v550_v56  ;;  %v549_v58 = vadd.f32 %v2641_v49, %v540_v57  ;;  %v2360_v56 = vld [vmem:[#allocation6 + $0x8] sm:$0xff]   ;;  %v2361_v57 = vld [vmem:[#allocation6 + $0x20] sm:$0xff]  }
 0x197   :  { %v551_v59 = vmax.f32 %v549_v58, 0.0  ;;  %v2362_v58 = vld [vmem:[#allocation6] sm:$0xff]  }
 0x199   :  { %553 = vst.msk [vmem:[#allocation3 + $0xa] sm:$0xff] %vm69_vm7, %v551_v59 }
 0x19c   :  { %v565_v60 = vld [vmem:[#allocation3 + $0x1] sm:$0xff] }
 0x19d   :  { %v554_v0 = vld [vmem:[#allocation3] sm:$0xff] }
 0x19e   :  { %v713_v17 = vld [vmem:[#allocation3 + $0x2] sm:$0xff] }
 0x1a0   :  { %v566_v63 = vld [vmem:[#allocation3 + $0x9] sm:$0xff] }
 0x1a1   :  { %v555_v1 = vld [vmem:[#allocation3 + $0x8] sm:$0xff]  ;;  %v567_v2 = vpack.c.bf16 %v566_v63, %v565_v60 }
 0x1a2   :  { %v556_v3 = vpack.c.bf16 %v555_v1, %v554_v0  ;;  %v714_v11 = vld [vmem:[#allocation3 + $0xa] sm:$0xff] }
 0x1a3   :  { %2155 = vmatmul.mubr.msk.bf16.vlgmr.msra.gmra.mxu1 %vm69_vm7, %v567_v2  ;;  %v795_v14 = vld [vmem:[#allocation3 + $0x3] sm:$0xff]  ;;  %v796_v15 = vld [vmem:[#allocation3 + $0xb] sm:$0xff]  ;;  %v715_v22 = vpack.c.bf16 %v714_v11, %v713_v17 }
 0x1a4   :  { %2167 = vmatmul.mubr.msk.bf16.vlgmr.msra.gmra.mxu0 %vm69_vm7, %v556_v3  ;;  %2171 = vmatpush3.bf16.msra.mxu1 %v2333_v61  ;;  %v797_v23 = vpack.c.bf16 %v796_v15, %v795_v14  ;;  %v877_v16 = vld [vmem:[#allocation3 + $0x4] sm:$0xff]  ;;  %v878_v33 = vld [vmem:[#allocation3 + $0xc] sm:$0xff] }
 0x1a5   :  { %2183 = vmatpush3.bf16.msra.mxu0 %v2334_v62  ;;  %2172 = vmatprep.subr.bf16.mxu1 %v2424_v5  ;;  %v879_v37 = vpack.c.bf16 %v878_v33, %v877_v16  ;;  %v2718_v16 = vld [vmem:[%s2769_s9] ss:$0 sm:$0xff] }
 0x1a6   :  { %2184 = vmatprep.subr.bf16.mxu0 %v2424_v5  ;;  %2178 = vmatprep.mubr.msk.bf16.mxu1 %vm2425_vm2, %v2424_v5 }
 0x1a7   :  { %2190 = vmatprep.mubr.msk.bf16.mxu0 %vm2425_vm2, %v2424_v5 }
 0x1a8   :  { %2173 = vmatpush3.bf16.msra.mxu1 %v2335_v4 }
 0x1a9   :  { %2185 = vmatpush3.bf16.msra.mxu0 %v2336_v6  ;;  %2174 = vmatprep.subr.bf16.mxu1 %v2424_v5 }
 0x1aa   :  { %2186 = vmatprep.subr.bf16.mxu0 %v2424_v5 }
 0x1ac   :  { %2175 = vmatpush3.bf16.msra.mxu1 %v2337_v7 }
 0x1ad   :  { %2187 = vmatpush3.bf16.msra.mxu0 %v2338_v8  ;;  %2176 = vmatprep.subr.bf16.mxu1 %v2424_v5 }
 0x1ae   :  { %2188 = vmatprep.subr.bf16.mxu0 %v2424_v5 }
 0x1b0   :  { %2177 = vmatpush3.bf16.msra.mxu1 %v2339_v9 }
 0x1b1   :  { %2189 = vmatpush3.bf16.msra.mxu0 %v2340_v10  ;;  %2194 = vmatprep.subr.bf16.mxu1 %v2424_v5 }
 0x1b2   :  { %2206 = vmatprep.subr.bf16.mxu0 %v2424_v5 }
 0x1b3   :  { %2179 = vmatmul.mubr.msk.bf16.vlgmr.msra.gmra.mxu1 %vm69_vm7, %v715_v22 }
 0x1b4   :  { %2191 = vmatmul.mubr.msk.bf16.vlgmr.msra.gmra.mxu0 %vm69_vm7, %v797_v23  ;;  %2195 = vmatpush3.bf16.msra.mxu1 %v2341_v18 }
 0x1b5   :  { %2207 = vmatpush3.bf16.msra.mxu0 %v2342_v21  ;;  %2196 = vmatprep.subr.bf16.mxu1 %v2424_v5 }
 0x1b6   :  { %2208 = vmatprep.subr.bf16.mxu0 %v2424_v5  ;;  %2210 = vmatprep.mubr.msk.bf16.mxu0 %vm2425_vm2, %v2424_v5 }
 0x1b7   :  { %2202 = vmatprep.mubr.msk.bf16.mxu1 %vm2425_vm2, %v2424_v5 }
 0x1b8   :  { %2197 = vmatpush3.bf16.msra.mxu1 %v2343_v24 }
 0x1b9   :  { %2209 = vmatpush3.bf16.msra.mxu0 %v2344_v25  ;;  %2198 = vmatprep.subr.bf16.mxu1 %v2424_v5 }
 0x1ba   :  { %2214 = vmatprep.subr.bf16.mxu0 %v2424_v5 }
 0x1bc   :  { %2211 = vmatmul.mubr.msk.bf16.vlgmr.msra.gmra.mxu0 %vm64_vm0, %v1128_v12  ;;  %2199 = vmatpush3.bf16.msra.mxu1 %v2345_v29 }
 0x1bd   :  { %2215 = vmatpush3.bf16.msra.mxu0 %v2346_v30  ;;  %2200 = vmatprep.subr.bf16.mxu1 %v2424_v5 }
 0x1be   :  { %2216 = vmatprep.subr.bf16.mxu0 %v2424_v5  ;;  %2218 = vmatprep.mubr.msk.bf16.mxu0 %vm2425_vm2, %v2424_v5 }
 0x1c0   :  { %2201 = vmatpush3.bf16.msra.mxu1 %v2347_v13 }
 0x1c1   :  { %2217 = vmatpush3.bf16.msra.mxu0 %v2348_v31  ;;  %2222 = vmatprep.subr.bf16.mxu1 %v2424_v5 }
 0x1c2   :  { %2230 = vmatprep.subr.bf16.mxu0 %v2424_v5 }
 0x1c3   :  { %2203 = vmatmul.mubr.msk.bf16.vlgmr.msra.gmra.mxu1 %vm69_vm7, %v879_v37 }
 0x1c4   :  { %2219 = vmatmul.mubr.msk.bf16.vlgmr.msra.gmra.mxu0 %vm64_vm0, %v1121_v38  ;;  %2223 = vmatpush3.bf16.msra.mxu1 %v2349_v35 }
 0x1c5   :  { %2231 = vmatpush3.bf16.msra.mxu0 %v2350_v36  ;;  %2224 = vmatprep.subr.bf16.mxu1 %v2424_v5 }
 0x1c6   :  { %2232 = vmatprep.subr.bf16.mxu0 %v2424_v5  ;;  %2226 = vmatprep.mubr.msk.bf16.mxu1 %vm2425_vm2, %v2424_v5 }
 0x1c7   :  { %2234 = vmatprep.mubr.msk.bf16.mxu0 %vm2425_vm2, %v2424_v5 }
 0x1c8   :  { %2225 = vmatpush3.bf16.msra.mxu1 %v2351_v39 }
 0x1c9   :  { %2233 = vmatpush3.bf16.msra.mxu0 %v2352_v20  ;;  %2238 = vmatprep.subr.bf16.mxu1 %v2424_v5 }
 0x1ca   :  { %2246 = vmatprep.subr.bf16.mxu0 %v2424_v5 }
 0x1cb   :  { %2227 = vmatmul.mubr.msk.bf16.vlgmr.msra.gmra.mxu1 %vm64_vm0, %v1247_v43 }
 0x1cc   :  { %2235 = vmatmul.mubr.msk.bf16.vlgmr.msra.gmra.mxu0 %vm64_vm0, %v1312_v44  ;;  %2239 = vmatpush3.bf16.msra.mxu1 %v2353_v19 }
 0x1cd   :  { %2242 = vmatprep.mubr.msk.bf16.mxu1 %vm2425_vm2, %v2424_v5  ;;  %2240 = vmatprep.subr.bf16.mxu1 %v2424_v5 }
 0x1ce   :  { %2254 = vmatprep.mubr.msk.bf16.mxu0 %vm2425_vm2, %v2424_v5  ;;  %2247 = vmatpush3.bf16.msra.mxu0 %v2355_v51 }
 0x1cf   :  { %2248 = vmatprep.subr.bf16.mxu0 %v2424_v5 }
 0x1d0   :  { %2241 = vmatpush3.bf16.msra.mxu1 %v2354_v46 }
 0x1d1   :  { %2258 = vmatprep.subr.bf16.mxu1 %v2424_v5 }
 0x1d2   :  { %2249 = vmatpush3.bf16.msra.mxu0 %v2357_v53 }
 0x1d3   :  { %2243 = vmatmul.mubr.msk.bf16.vlgmr.msra.gmra.mxu1 %vm64_vm0, %v1377_v50  ;;  %2250 = vmatprep.subr.bf16.mxu0 %v2424_v5 }
 0x1d4   :  { %2266 = vmatprep.mubr.msk.bf16.mxu1 %vm2425_vm2, %v2424_v5  ;;  %2259 = vmatpush3.bf16.msra.mxu1 %v2356_v52 }
 0x1d5   :  { %2260 = vmatprep.subr.bf16.mxu1 %v2424_v5 }
 0x1d6   :  { %2251 = vmatpush3.bf16.msra.mxu0 %v2359_v55 }
 0x1d7   :  { %2252 = vmatprep.subr.bf16.mxu0 %v2424_v5 }
 0x1d8   :  { %2261 = vmatpush3.bf16.msra.mxu1 %v2358_v54 }
 0x1d9   :  { %2262 = vmatprep.subr.bf16.mxu1 %v2424_v5 }
 0x1da   :  { %2253 = vmatpush3.bf16.msra.mxu0 %v2361_v57 }
 0x1db   :  { %2270 = vmatprep.subr.bf16.mxu0 %v2424_v5 }
 0x1dc   :  { %2263 = vmatpush3.bf16.msra.mxu1 %v2360_v56 }
 0x1dd   :  { %2264 = vmatprep.subr.bf16.mxu1 %v2424_v5 }
 0x1e0   :  { %2265 = vmatpush3.bf16.msra.mxu1 %v2362_v58 }
 0x1e1   :  { %2282 = vmatprep.subr.bf16.mxu1 %v2424_v5 }
 0x263   :  { %v638_v59 = vpop.f32.mrf.mxu1 }
 0x264   :  { %v706_v60 = vpop.f32.mrf.mxu0 }
 0x265   :  { %v2156_v61 = vpop.f32.mrf.mxu1  ;;  %v707_v15 = vadd.f32 %v706_v60, %v638_v59 }
 0x266   :  { %v2168_v62 = vpop.f32.mrf.mxu0 }
 0x267   :  { %v641_v63 = vpop.f32.mrf.mxu1 }
 0x268   :  { %v709_v0 = vpop.f32.mrf.mxu0 }
 0x269   :  { %v2157_v1 = vpop.f32.mrf.mxu1  ;;  %v710_v22 = vadd.f32 %v709_v0, %v641_v63 }
 0x26a   :  { %v2169_v2 = vpop.f32.mrf.mxu0 }
 0x273   :  { %v786_v3 = vpop.f32.mrf.mxu1 }
 0x274   :  { %v868_v4 = vpop.f32.mrf.mxu0  ;;  %v793_v18 = vadd.f32 %v786_v3, %v707_v15 }
 0x275   :  { %v2180_v6 = vpop.f32.mrf.mxu1 }
 0x276   :  { %v2192_v7 = vpop.f32.mrf.mxu0  ;;  %v875_v24 = vadd.f32 %v868_v4, %v793_v18  ;;  %v2368_v18 = vld [vmem:[#allocation6 + $0x68] sm:$0xff]  }
 0x277   :  { %v789_v8 = vpop.f32.mrf.mxu1  ;;  %v2363_v7 = vld [vmem:[#allocation6 + $0x58] sm:$0xff]  }
 0x278   :  { %v871_v9 = vpop.f32.mrf.mxu0  ;;  %v794_v25 = vadd.f32 %v789_v8, %v710_v22  ;;  %v2364_v8 = vld [vmem:[#allocation6 + $0x78] sm:$0xff]   ;;  %v2370_v22 = vld [vmem:[#allocation6 + $0x60] sm:$0xff]  }
 0x279   :  { %v2181_v10 = vpop.f32.mrf.mxu1 }
 0x27a   :  { %v2193_v11 = vpop.f32.mrf.mxu0  ;;  %v876_v31 = vadd.f32 %v871_v9, %v794_v25 }
 0x27c   :  { %v1182_v14 = vpop.f32.mrf.mxu0 }
 0x27e   :  { %v2212_v17 = vpop.f32.mrf.mxu0 }
 0x27f   :  { %v2366_v17 = vld [vmem:[#allocation6 + $0x70] sm:$0xff]  }
 0x280   :  { %v1185_v21 = vpop.f32.mrf.mxu0 }
 0x282   :  { %v2213_v23 = vpop.f32.mrf.mxu0 }
 0x283   :  { %v950_v26 = vpop.f32.mrf.mxu1 }
 0x284   :  { %v1238_v29 = vpop.f32.mrf.mxu0  ;;  %v957_v30 = vadd.f32 %v950_v26, %v875_v24 }
 0x285   :  { %v2204_v12 = vpop.f32.mrf.mxu1  ;;  %v1239_v41 = vadd.f32 %v1238_v29, %v1182_v14  ;;  %v2371_v29 = vld [vmem:[#allocation6 + $0x98] sm:$0xff]  }
 0x286   :  { %v2220_v13 = vpop.f32.mrf.mxu0  ;;  %v966_v32 = vmul.f32 %v2712_v27, %v957_v30 }
 0x287   :  { %v953_v33 = vpop.f32.mrf.mxu1  ;;  %v2372_v13 = vld [vmem:[#allocation6 + $0x90] sm:$0xff]  }
 0x288   :  { %v1241_v34 = vpop.f32.mrf.mxu0  ;;  %v958_v35 = vadd.f32 %v953_v33, %v876_v31  ;;  %v975_v38 = vadd.f32 %v2718_v16, %v966_v32  ;;  %v2373_v31 = vld [vmem:[#allocation6 + $0x88] sm:$0xff]   ;;  %v2374_v32 = vld [vmem:[#allocation6 + $0x80] sm:$0xff]  }
 0x289   :  { %v2205_v36 = vpop.f32.mrf.mxu1  ;;  %v1242_v51 = vadd.f32 %v1241_v34, %v1185_v21  ;;  %v2369_v21 = vld [vmem:[#allocation6 + $0x40] sm:$0xff]  }
 0x28a   :  { %v2221_v37 = vpop.f32.mrf.mxu0  ;;  %v967_v39 = vmul.f32 %v2712_v27, %v958_v35  ;;  %v977_v43 = vmax.f32 %v975_v38, 0.0 }
 0x28b   :  { %v1301_v20 = vpop.f32.mrf.mxu1 }
 0x28c   :  { %v1366_v40 = vpop.f32.mrf.mxu0  ;;  %v976_v28 = vadd.f32 %v2718_v16, %v967_v39  ;;  %v1308_v46 = vadd.f32 %v1301_v20, %v1239_v41 }
 0x28d   :  { %v2228_v42 = vpop.f32.mrf.mxu1 }
 0x28e   :  { %v2236_v19 = vpop.f32.mrf.mxu0  ;;  %v978_v44 = vmax.f32 %v976_v28, 0.0  ;;  %v1373_v54 = vadd.f32 %v1366_v40, %v1308_v46 }
 0x28f   :  { %v1304_v47 = vpop.f32.mrf.mxu1 }
 0x290   :  { %v1369_v48 = vpop.f32.mrf.mxu0  ;;  %v2018_v50 = vpack.c.bf16 %v978_v44, %v977_v43  ;;  %v1309_v55 = vadd.f32 %v1304_v47, %v1242_v51 }
 0x291   :  { %v2229_v52 = vpop.f32.mrf.mxu1 }
 0x292   :  { %v2237_v53 = vpop.f32.mrf.mxu0  ;;  %2019 = vst [vmem:[%s2770_s10] sm:$0xff] %v2018_v50   ;;  %v1374_v59 = vadd.f32 %v1369_v48, %v1309_v55 }
 0x293   :  { %v1431_v56 = vpop.f32.mrf.mxu1 }
 0x294   :  { %v1438_v57 = vadd.f32 %v1431_v56, %v1373_v54 }
 0x295   :  { %v2244_v58 = vpop.f32.mrf.mxu1 }
 0x296   :  { %v1447_v60 = vmul.f32 %v2636_v45, %v1438_v57 }
 0x297   :  { %v1434_v61 = vpop.f32.mrf.mxu1 }
 0x298   :  { %v1456_v62 = vadd.f32 %v2641_v49, %v1447_v60  ;;  %v1439_v63 = vadd.f32 %v1434_v61, %v1374_v59 }
 0x299   :  { %v2245_v0 = vpop.f32.mrf.mxu1 }
 0x29a   :  { %v1458_v1 = vmax.f32 %v1456_v62, 0.0  ;;  %v1448_v2 = vmul.f32 %v2636_v45, %v1439_v63  ;;  %v2365_v45 = vld [vmem:[#allocation6 + $0x50] sm:$0xff]  }
 0x29c   :  { %1460 = vst.msk [vmem:[#allocation3 + $0x2] sm:$0xff] %vm69_vm7, %v1458_v1  ;;  %v1457_v3 = vadd.f32 %v2641_v49, %v1448_v2  ;;  %v2367_v49 = vld [vmem:[#allocation6 + $0x48] sm:$0xff]  }
 0x29e   :  { %v1459_v4 = vmax.f32 %v1457_v3, 0.0 }
 0x2a0   :  { %1461 = vst.msk [vmem:[#allocation3 + $0xa] sm:$0xff] %vm69_vm7, %v1459_v4 }
 0x2a3   :  { %v1473_v6 = vld [vmem:[#allocation3 + $0x1] sm:$0xff] }
 0x2a4   :  { %v1462_v10 = vld [vmem:[#allocation3] sm:$0xff] }
 0x2a5   :  { %v1620_v26 = vld [vmem:[#allocation3 + $0x2] sm:$0xff] }
 0x2a7   :  { %v1474_v9 = vld [vmem:[#allocation3 + $0x9] sm:$0xff] }
 0x2a8   :  { %v1463_v11 = vld [vmem:[#allocation3 + $0x8] sm:$0xff]  ;;  %v1475_v14 = vpack.c.bf16 %v1474_v9, %v1473_v6 }
 0x2a9   :  { %v1464_v15 = vpack.c.bf16 %v1463_v11, %v1462_v10  ;;  %v1621_v23 = vld [vmem:[#allocation3 + $0xa] sm:$0xff] }
 0x2aa   :  { %2255 = vmatmul.mubr.msk.bf16.vlgmr.msra.gmra.mxu0 %vm69_vm7, %v1475_v14  ;;  %v1701_v24 = vld [vmem:[#allocation3 + $0x3] sm:$0xff]  ;;  %v1702_v25 = vld [vmem:[#allocation3 + $0xb] sm:$0xff]  ;;  %v1622_v30 = vpack.c.bf16 %v1621_v23, %v1620_v26 }
 0x2ab   :  { %2267 = vmatmul.mubr.msk.bf16.vlgmr.msra.gmra.mxu1 %vm69_vm7, %v1464_v15  ;;  %2271 = vmatpush3.bf16.msra.mxu0 %v2363_v7  ;;  %v1703_v12 = vpack.c.bf16 %v1702_v25, %v1701_v24  ;;  %v1782_v33 = vld [vmem:[#allocation3 + $0x4] sm:$0xff]  ;;  %v1783_v34 = vld [vmem:[#allocation3 + $0xc] sm:$0xff] }
 0x2ac   :  { %2283 = vmatpush3.bf16.msra.mxu1 %v2364_v8  ;;  %2272 = vmatprep.subr.bf16.mxu0 %v2424_v5  ;;  %v1784_v35 = vpack.c.bf16 %v1783_v34, %v1782_v33 }
 0x2ad   :  { %2284 = vmatprep.subr.bf16.mxu1 %v2424_v5  ;;  %2278 = vmatprep.mubr.msk.bf16.mxu0 %vm2425_vm2, %v2424_v5 }
 0x2ae   :  { %2290 = vmatprep.mubr.msk.bf16.mxu1 %vm2425_vm2, %v2424_v5 }
 0x2af   :  { %2273 = vmatpush3.bf16.msra.mxu0 %v2365_v45 }
 0x2b0   :  { %2285 = vmatpush3.bf16.msra.mxu1 %v2366_v17  ;;  %2274 = vmatprep.subr.bf16.mxu0 %v2424_v5 }
 0x2b1   :  { %2286 = vmatprep.subr.bf16.mxu1 %v2424_v5 }
 0x2b3   :  { %2275 = vmatpush3.bf16.msra.mxu0 %v2367_v49 }
 0x2b4   :  { %2287 = vmatpush3.bf16.msra.mxu1 %v2368_v18  ;;  %2276 = vmatprep.subr.bf16.mxu0 %v2424_v5 }
 0x2b5   :  { %2288 = vmatprep.subr.bf16.mxu1 %v2424_v5 }
 0x2b7   :  { %2277 = vmatpush3.bf16.msra.mxu0 %v2369_v21 }
 0x2b8   :  { %2289 = vmatpush3.bf16.msra.mxu1 %v2370_v22  ;;  %2294 = vmatprep.subr.bf16.mxu0 %v2424_v5 }
 0x2ba   :  { %2279 = vmatmul.mubr.msk.bf16.vlgmr.msra.gmra.mxu0 %vm69_vm7, %v1622_v30 }
 0x2bb   :  { %2291 = vmatmul.mubr.msk.bf16.vlgmr.msra.gmra.mxu1 %vm69_vm7, %v1703_v12  ;;  %2295 = vmatpush3.bf16.msra.mxu0 %v2371_v29 }
 0x2bc   :  { %2302 = vmatprep.mubr.msk.bf16.mxu0 %vm2425_vm2, %v2424_v5  ;;  %2296 = vmatprep.subr.bf16.mxu0 %v2424_v5 }
 0x2bf   :  { %2297 = vmatpush3.bf16.msra.mxu0 %v2372_v13 }
 0x2c0   :  { %2298 = vmatprep.subr.bf16.mxu0 %v2424_v5 }
 0x2c3   :  { %2299 = vmatpush3.bf16.msra.mxu0 %v2373_v31 }
 0x2c4   :  { %2300 = vmatprep.subr.bf16.mxu0 %v2424_v5 }
 0x2c7   :  { %2301 = vmatpush3.bf16.msra.mxu0 %v2374_v32 }
 0x2ca   :  { %2303 = vmatmul.mubr.msk.bf16.vlgmr.msra.gmra.mxu0 %vm69_vm7, %v1784_v35 }
 0x36a   :  { %v1545_v36 = vpop.f32.mrf.mxu0 }
 0x36b   :  { %v1613_v37 = vpop.f32.mrf.mxu1 }
 0x36c   :  { %v2256_v38 = vpop.f32.mrf.mxu0  ;;  %v1614_v50 = vadd.f32 %v1613_v37, %v1545_v36 }
 0x36d   :  { %v2268_v39 = vpop.f32.mrf.mxu1 }
 0x36e   :  { %v1548_v20 = vpop.f32.mrf.mxu0 }
 0x36f   :  { %v1616_v40 = vpop.f32.mrf.mxu1 }
 0x370   :  { %v2257_v41 = vpop.f32.mrf.mxu0  ;;  %v1617_v52 = vadd.f32 %v1616_v40, %v1548_v20 }
 0x371   :  { %v2269_v28 = vpop.f32.mrf.mxu1 }
 0x37a   :  { %v1692_v42 = vpop.f32.mrf.mxu0 }
 0x37b   :  { %v1773_v19 = vpop.f32.mrf.mxu1  ;;  %v1699_v51 = vadd.f32 %v1692_v42, %v1614_v50 }
 0x37c   :  { %v2280_v43 = vpop.f32.mrf.mxu0 }
 0x37d   :  { %v2292_v44 = vpop.f32.mrf.mxu1  ;;  %v1780_v53 = vadd.f32 %v1773_v19, %v1699_v51 }
 0x37e   :  { %v1695_v46 = vpop.f32.mrf.mxu0 }
 0x37f   :  { %v1776_v5 = vpop.f32.mrf.mxu1  ;;  %v1700_v54 = vadd.f32 %v1695_v46, %v1617_v52 }
 0x380   :  { %v2281_v47 = vpop.f32.mrf.mxu0 }
 0x381   :  { %v2293_v48 = vpop.f32.mrf.mxu1  ;;  %v1781_v58 = vadd.f32 %v1776_v5, %v1700_v54 }
 0x38a   :  { %v1854_v55 = vpop.f32.mrf.mxu0 }
 0x38b   :  { %v1861_v56 = vadd.f32 %v1854_v55, %v1780_v53 }
 0x38c   :  { %v2304_v57 = vpop.f32.mrf.mxu0 }
 0x38d   :  { %v1870_v59 = vmul.f32 %v2712_v27, %v1861_v56 }
 0x38e   :  { %v1857_v60 = vpop.f32.mrf.mxu0 }
 0x38f   :  { %v1862_v61 = vadd.f32 %v1857_v60, %v1781_v58  ;;  %v1879_v63 = vadd.f32 %v2718_v16, %v1870_v59 }
 0x390   :  { %v2305_v62 = vpop.f32.mrf.mxu0 }
 0x391   :  { %v1871_v0 = vmul.f32 %v2712_v27, %v1862_v61  ;;  %v1881_v2 = vmax.f32 %v1879_v63, 0.0 }
 0x393   :  { %v1880_v1 = vadd.f32 %v2718_v16, %v1871_v0 }
 0x395   :  { %v1882_v3 = vmax.f32 %v1880_v1, 0.0 }
 0x397   :  { %v2023_v4 = vpack.c.bf16 %v1882_v3, %v1881_v2 }
 0x399   :  { %2025 = vst [vmem:[%s2770_s10 + $0x8] sm:$0xff] %v2023_v4  }
 0x39a   :  { %1898 = vsyncpa [#allocation5], 1 }
 0x39b   :  { %1899 = vsyncpa [#allocation7], 1 }

</bundles_post_ra>
